<compile_context>
chip_gen: v7x
topology: tpu7x:2x2x1
jax: 0.10.0
libtpu: 0.0.40
codegen_flags: <defaults>
</compile_context>

<pallas_src>
import functools
import numpy as np

import jax
import jax.numpy as jnp
from jax.experimental import pallas as pl
from jax.experimental.pallas import tpu as pltpu

_HALF_LOG_2PI = 0.5 * np.log(2.0 * np.pi)


def _softplus(v):
    # Matches F.softplus(v, beta=1, threshold=20)
    return jnp.where(v > 20.0, v, jnp.log1p(jnp.exp(jnp.minimum(v, 20.0))))


def _pick_tile(dim, candidates=(512, 256, 128)):
    for c in candidates:
        if dim % c == 0:
            return c
    return dim  # fall back to the full (untiled) dimension


def _vmem_limit_bytes(batch, tk, tn, n_planes):
    # double-buffered per-step inputs + resident output blocks + margin
    per_step_in = (batch * tk + n_planes * tk * tn + 3 * tn) * 4
    resident_out = (batch * tn + 2 * tn) * 4
    need = 2 * per_step_in + 2 * resident_out + (8 << 20)
    return int(min(max(need, 16 << 20), 64 << 20))


# ----------------------------------------------------------------------------
# Kernels
# ----------------------------------------------------------------------------
def _bayes_linear_sample_kernel(x_ref, wmu_ref, wp_ref, bmu_ref, bp_ref,
                                epsw_ref, epsb_ref,
                                out_ref, qpart_ref, ppart_ref,
                                *, prior_mu):
    k = pl.program_id(1)
    k_last = pl.num_programs(1) - 1

    w_mu = wmu_ref[...]                       # (tk, tn)
    w_p = wp_ref[...]
    eps_w = epsw_ref[...]

    std_w = 1e-6 + _softplus(w_p)
    w_sample = w_mu + std_w * eps_w           # sampled weights for this tile

    partial_out = jnp.dot(x_ref[...], w_sample,
                          preferred_element_type=jnp.float32)   # (B, tn)

    # Fused per-column (lane-wise) partial reductions over the tk rows.
    q_cols = jnp.sum(jnp.log(std_w) + 0.5 * (eps_w * eps_w),
                     axis=0, keepdims=True)                     # (1, tn)
    dev = w_sample - prior_mu
    p_cols = jnp.sum(dev * dev, axis=0, keepdims=True)          # (1, tn)

    @pl.when(k == 0)
    def _():
        out_ref[...] = jnp.zeros_like(out_ref)
        qpart_ref[...] = jnp.zeros_like(qpart_ref)
        ppart_ref[...] = jnp.zeros_like(ppart_ref)

    out_ref[...] += partial_out
    qpart_ref[...] += q_cols
    ppart_ref[...] += p_cols

    @pl.when(k == k_last)
    def _():
        # Bias terms are added exactly once per output-column tile.
        b_mu = bmu_ref[...]                   # (1, tn)
        b_p = bp_ref[...]
        eps_b = epsb_ref[...]
        std_b = 1e-6 + _softplus(b_p)
        b_sample = b_mu + std_b * eps_b
        out_ref[...] += b_sample
        qpart_ref[...] += jnp.log(std_b) + 0.5 * (eps_b * eps_b)
        d_b = b_sample - prior_mu
        ppart_ref[...] += d_b * d_b


def _linear_eval_kernel(x_ref, wmu_ref, bmu_ref, out_ref):
    k = pl.program_id(1)

    @pl.when(k == 0)
    def _():
        out_ref[...] = jnp.zeros_like(out_ref)

    out_ref[...] += jnp.dot(x_ref[...], wmu_ref[...],
                            preferred_element_type=jnp.float32)

    @pl.when(k == pl.num_programs(1) - 1)
    def _():
        out_ref[...] += bmu_ref[...]


# ----------------------------------------------------------------------------
# Wrapper ("module")
# ----------------------------------------------------------------------------
class BayesLinearNormalq:
    """JAX/Pallas port of BayesLinear_Normalq with an isotropic Gaussian prior."""

    def __init__(self, n_in, n_out, key, prior_mu=0.0, prior_sigma=0.1,
                 block_k=None, block_n=None):
        self.n_in = n_in
        self.n_out = n_out
        self.prior_mu = float(prior_mu)
        self.prior_sigma = float(prior_sigma)

        self.block_k = block_k if block_k is not None else _pick_tile(n_in)
        self.block_n = block_n if block_n is not None else _pick_tile(n_out)
        assert n_in % self.block_k == 0 and n_out % self.block_n == 0

        k1, k2, k3, k4 = jax.random.split(key, 4)
        # Matches torch .uniform_ init ranges in __init__.
        self.W_mu = jax.random.uniform(k1, (n_in, n_out), jnp.float32, -0.1, 0.1)
        self.W_p = jax.random.uniform(k2, (n_in, n_out), jnp.float32, -3.0, -2.0)
        self.b_mu = jax.random.uniform(k3, (n_out,), jnp.float32, -0.1, 0.1)
        self.b_p = jax.random.uniform(k4, (n_out,), jnp.float32, -3.0, -2.0)

        self.training = True

    # -- sampled forward (training or sample=True) -----------------------------
    def _forward_sample(self, X, eps_key):
        B = X.shape[0]
        n_in, n_out = self.n_in, self.n_out
        tk, tn = self.block_k, self.block_n
        grid = (n_out // tn, n_in // tk)          # (parallel j, reduction k)

        kW, kb = jax.random.split(eps_key)
        eps_W = jax.random.normal(kW, (n_in, n_out), jnp.float32)
        eps_b = jax.random.normal(kb, (n_out,), jnp.float32)

        kernel = functools.partial(_bayes_linear_sample_kernel,
                                   prior_mu=self.prior_mu)

        w_spec = pl.BlockSpec((tk, tn), lambda j, k: (k, j))
        row_spec = pl.BlockSpec((1, tn), lambda j, k: (0, j))
        x_spec = pl.BlockSpec((B, tk), lambda j, k: (0, k))
        out_spec = pl.BlockSpec((B, tn), lambda j, k: (0, j))

        cost = pl.CostEstimate(
            flops=int(2 * B * n_in * n_out + 12 * n_in * n_out),
            transcendentals=int(3 * n_in * n_out),
            bytes_accessed=int(4 * (3 * n_in * n_out + B * n_in + B * n_out
                                    + 5 * n_out)),
        )

        out, q_parts, p_parts = pl.pallas_call(
            kernel,
            out_shape=(
                jax.ShapeDtypeStruct((B, n_out), jnp.float32),
                jax.ShapeDtypeStruct((1, n_out), jnp.float32),
                jax.ShapeDtypeStruct((1, n_out), jnp.float32),
            ),
            grid=grid,
            in_specs=[x_spec, w_spec, w_spec, row_spec, row_spec, w_spec, row_spec],
            out_specs=(out_spec, row_spec, row_spec),
            compiler_params=pltpu.CompilerParams(
                dimension_semantics=("parallel", "arbitrary"),
                vmem_limit_bytes=_vmem_limit_bytes(B, tk, tn, n_planes=3),
            ),
            cost_estimate=cost,
        )(
            X,
            self.W_mu,
            self.W_p,
            self.b_mu.reshape(1, n_out),
            self.b_p.reshape(1, n_out),
            eps_W,
            eps_b.reshape(1, n_out),
        )

        # Hoisted constants + scales (applied once, host side).
        n_elem = n_in * n_out + n_out
        lqw = -n_elem * _HALF_LOG_2PI - jnp.sum(q_parts)
        inv_var = 1.0 / (self.prior_sigma * self.prior_sigma)
        lpw = (-n_elem * (_HALF_LOG_2PI + np.log(self.prior_sigma))
               - 0.5 * inv_var * jnp.sum(p_parts))
        return out, lqw, lpw

    # -- deterministic forward (eval, sample=False) -----------------------------
    def _forward_eval(self, X):
        B = X.shape[0]
        n_in, n_out = self.n_in, self.n_out
        tk, tn = self.block_k, self.block_n
        grid = (n_out // tn, n_in // tk)

        out = pl.pallas_call(
            _linear_eval_kernel,
            out_shape=jax.ShapeDtypeStruct((B, n_out), jnp.float32),
            grid=grid,
            in_specs=[
                pl.BlockSpec((B, tk), lambda j, k: (0, k)),
                pl.BlockSpec((tk, tn), lambda j, k: (k, j)),
                pl.BlockSpec((1, tn), lambda j, k: (0, j)),
            ],
            out_specs=pl.BlockSpec((B, tn), lambda j, k: (0, j)),
            compiler_params=pltpu.CompilerParams(
                dimension_semantics=("parallel", "arbitrary"),
                vmem_limit_bytes=_vmem_limit_bytes(B, tk, tn, n_planes=1),
            ),
            cost_estimate=pl.CostEstimate(
                flops=int(2 * B * n_in * n_out),
                transcendentals=0,
                bytes_accessed=int(4 * (n_in * n_out + B * n_in + B * n_out + n_out)),
            ),
        )(X, self.W_mu, self.b_mu.reshape(1, n_out))
        return out, 0, 0

    def __call__(self, X, eps_key=None, sample=False):
        if (not self.training) and (not sample):
            return self._forward_eval(X)
        assert eps_key is not None, "sampled forward needs an RNG key for eps"
        return self._forward_sample(X, eps_key)


# ----------------------------------------------------------------------------
# Pure-JAX reference (original, un-simplified formulas) for validation
# ----------------------------------------------------------------------------
def _reference_sample(layer, X, eps_key):
    kW, kb = jax.random.split(eps_key)
    eps_W = jax.random.normal(kW, (layer.n_in, layer.n_out), jnp.float32)
    eps_b = jax.random.normal(kb, (layer.n_out,), jnp.float32)
    std_w = 1e-6 + _softplus(layer.W_p)
    std_b = 1e-6 + _softplus(layer.b_p)
    W = layer.W_mu + std_w * eps_W
    b = layer.b_mu + std_b * eps_b
    out = X @ W + b[None, :]

    def gll(v, mu, sigma):
        return jnp.sum(-_HALF_LOG_2PI - jnp.log(sigma) - 0.5 * ((v - mu) / sigma) ** 2)

    lqw = gll(W, layer.W_mu, std_w) + gll(b, layer.b_mu, std_b)
    s, m = layer.prior_sigma, layer.prior_mu
    lpw = (jnp.sum(-_HALF_LOG_2PI - np.log(s) - 0.5 * ((W - m) / s) ** 2)
           + jnp.sum(-_HALF_LOG_2PI - np.log(s) - 0.5 * ((b - m) / s) ** 2))
    return out, lqw, lpw


if __name__ == "__main__":
    key = jax.random.PRNGKey(0)
    k_param, k_x, k_eps = jax.random.split(key, 3)

    # Small but tiling-exercising shapes: grid = (2, 2) with 128x128 tiles,
    # lane-dense (multiple-of-128) n_out, batch a multiple of 8 sublanes.
    B, N_IN, N_OUT = 16, 256, 256
    layer = BayesLinearNormalq(N_IN, N_OUT, k_param, prior_mu=0.0, prior_sigma=0.1,
                               block_k=128, block_n=128)

    X = jax.random.normal(k_x, (B, N_IN), jnp.float32)

    # sampled (training) path
    out, lqw, lpw = layer(X, eps_key=k_eps, sample=True)
    out, lqw, lpw = jax.block_until_ready((out, lqw, lpw))

    # eval path
    layer.training = False
    out_eval, z0, z1 = layer(X, sample=False)
    out_eval = jax.block_until_ready(out_eval)

    # validate against pure-JAX reference (original formulas)
    ref_out, ref_lqw, ref_lpw = _reference_sample(layer, X, k_eps)
    np.testing.assert_allclose(np.asarray(out), np.asarray(ref_out),
                               rtol=1e-4, atol=1e-4)
    np.testing.assert_allclose(float(lqw), float(ref_lqw), rtol=1e-4)
    np.testing.assert_allclose(float(lpw), float(ref_lpw), rtol=1e-4)
    np.testing.assert_allclose(
        np.asarray(out_eval),
        np.asarray(X @ layer.W_mu + layer.b_mu[None, :]),
        rtol=1e-4, atol=1e-4,
    )

    print("KERNEL_OK")
</pallas_src>

<mosaic_0001>
module attributes {stable_mosaic.version = 11 : i64} {
  func.func @_bayes_linear_sample_kernel(%arg0: i32, %arg1: i32, %arg2: memref<16x128xf32, #tpu.memory_space<vmem>>, %arg3: memref<128x128xf32, #tpu.memory_space<vmem>>, %arg4: memref<128x128xf32, #tpu.memory_space<vmem>>, %arg5: memref<1x128xf32, #tpu.memory_space<vmem>>, %arg6: memref<1x128xf32, #tpu.memory_space<vmem>>, %arg7: memref<128x128xf32, #tpu.memory_space<vmem>>, %arg8: memref<1x128xf32, #tpu.memory_space<vmem>>, %arg9: memref<16x128xf32, #tpu.memory_space<vmem>>, %arg10: memref<1x128xf32, #tpu.memory_space<vmem>>, %arg11: memref<1x128xf32, #tpu.memory_space<vmem>>) attributes {dimension_semantics = [#tpu.dimension_semantics<parallel>, #tpu.dimension_semantics<arbitrary>], iteration_bounds = array<i64: 2, 2>, scalar_prefetch = 0 : i64, scratch_operands = 0 : i64, tpu.core_type = #tpu.core_type<tc>, window_params = [{transform_indices = @transform_0, window_bounds = array<i64: 16, 128>}, {transform_indices = @transform_1, window_bounds = array<i64: 128, 128>}, {transform_indices = @transform_2, window_bounds = array<i64: 128, 128>}, {transform_indices = @transform_3, window_bounds = array<i64: 1, 128>}, {transform_indices = @transform_4, window_bounds = array<i64: 1, 128>}, {transform_indices = @transform_5, window_bounds = array<i64: 128, 128>}, {transform_indices = @transform_6, window_bounds = array<i64: 1, 128>}, {transform_indices = @transform_7, window_bounds = array<i64: 16, 128>}, {transform_indices = @transform_8, window_bounds = array<i64: 1, 128>}, {transform_indices = @transform_9, window_bounds = array<i64: 1, 128>}]} {
    %c0 = arith.constant 0 : index
    %c0_0 = arith.constant 0 : index
    %0 = vector.load %arg3[%c0, %c0_0] : memref<128x128xf32, #tpu.memory_space<vmem>>, vector<128x128xf32>
    %c0_1 = arith.constant 0 : index
    %c0_2 = arith.constant 0 : index
    %1 = vector.load %arg4[%c0_1, %c0_2] : memref<128x128xf32, #tpu.memory_space<vmem>>, vector<128x128xf32>
    %c0_3 = arith.constant 0 : index
    %c0_4 = arith.constant 0 : index
    %2 = vector.load %arg7[%c0_3, %c0_4] : memref<128x128xf32, #tpu.memory_space<vmem>>, vector<128x128xf32>
    %cst = arith.constant 2.000000e+01 : f32
    %3 = vector.broadcast %cst : f32 to vector<128x128xf32>
    %4 = arith.cmpf ogt, %1, %3 : vector<128x128xf32>
    %cst_5 = arith.constant 2.000000e+01 : f32
    %5 = vector.broadcast %cst_5 : f32 to vector<128x128xf32>
    %6 = arith.minimumf %1, %5 : vector<128x128xf32>
    %7 = math.exp %6 : vector<128x128xf32>
    %8 = math.log1p %7 : vector<128x128xf32>
    %9 = arith.select %4, %1, %8 : vector<128x128xi1>, vector<128x128xf32>
    %cst_6 = arith.constant 9.99999997E-7 : f32
    %10 = vector.broadcast %cst_6 : f32 to vector<128x128xf32>
    %11 = arith.addf %10, %9 : vector<128x128xf32>
    %12 = arith.mulf %11, %2 : vector<128x128xf32>
    %13 = arith.addf %0, %12 : vector<128x128xf32>
    %c0_7 = arith.constant 0 : index
    %c0_8 = arith.constant 0 : index
    %14 = vector.load %arg2[%c0_7, %c0_8] : memref<16x128xf32, #tpu.memory_space<vmem>>, vector<16x128xf32>
    %cst_9 = arith.constant dense<0.000000e+00> : vector<16x128xf32>
    %15 = tpu.matmul %14, %13, %cst_9 {dimension_numbers = #tpu.dot_dimension_numbers<[1], [0], [0], [1], [0, 0, 1, 1], [], []>} : vector<16x128xf32>, vector<128x128xf32>, vector<16x128xf32> -> vector<16x128xf32>
    %16 = math.log %11 : vector<128x128xf32>
    %17 = arith.mulf %2, %2 : vector<128x128xf32>
    %cst_10 = arith.constant 5.000000e-01 : f32
    %18 = vector.broadcast %cst_10 : f32 to vector<128x128xf32>
    %19 = arith.mulf %18, %17 : vector<128x128xf32>
    %20 = arith.addf %16, %19 : vector<128x128xf32>
    %cst_11 = arith.constant dense<0.000000e+00> : vector<128xf32>
    %21 = vector.multi_reduction <add>, %20, %cst_11 [0] : vector<128x128xf32> to vector<128xf32>
    %22 = vector.shape_cast %21 : vector<128xf32> to vector<1x128xf32>
    %cst_12 = arith.constant 0.000000e+00 : f32
    %23 = vector.broadcast %cst_12 : f32 to vector<128x128xf32>
    %24 = arith.subf %13, %23 : vector<128x128xf32>
    %25 = arith.mulf %24, %24 : vector<128x128xf32>
    %cst_13 = arith.constant dense<0.000000e+00> : vector<128xf32>
    %26 = vector.multi_reduction <add>, %25, %cst_13 [0] : vector<128x128xf32> to vector<128xf32>
    %27 = vector.shape_cast %26 : vector<128xf32> to vector<1x128xf32>
    %c0_i32 = arith.constant 0 : i32
    %28 = arith.cmpi eq, %arg1, %c0_i32 : i32
    %29 = arith.extui %28 : i1 to i32
    %c0_i32_14 = arith.constant 0 : i32
    %30 = arith.cmpi ne, %29, %c0_i32_14 : i32
    scf.if %30 {
      %cst_28 = arith.constant 0.000000e+00 : f32
      %43 = vector.broadcast %cst_28 : f32 to vector<16x128xf32>
      %c0_29 = arith.constant 0 : index
      %c0_30 = arith.constant 0 : index
      %44 = vector.load %arg9[%c0_29, %c0_30] : memref<16x128xf32, #tpu.memory_space<vmem>>, vector<16x128xf32>
      tpu.vector_store %arg9[%c0_29, %c0_30], %43 {strides = array<i32>} : memref<16x128xf32, #tpu.memory_space<vmem>>, vector<16x128xf32>,
      %cst_31 = arith.constant 0.000000e+00 : f32
      %45 = vector.broadcast %cst_31 : f32 to vector<1x128xf32>
      %c0_32 = arith.constant 0 : index
      %c0_33 = arith.constant 0 : index
      %46 = vector.load %arg10[%c0_32, %c0_33] : memref<1x128xf32, #tpu.memory_space<vmem>>, vector<1x128xf32>
      tpu.vector_store %arg10[%c0_32, %c0_33], %45 {strides = array<i32>} : memref<1x128xf32, #tpu.memory_space<vmem>>, vector<1x128xf32>,
      %cst_34 = arith.constant 0.000000e+00 : f32
      %47 = vector.broadcast %cst_34 : f32 to vector<1x128xf32>
      %c0_35 = arith.constant 0 : index
      %c0_36 = arith.constant 0 : index
      %48 = vector.load %arg11[%c0_35, %c0_36] : memref<1x128xf32, #tpu.memory_space<vmem>>, vector<1x128xf32>
      tpu.vector_store %arg11[%c0_35, %c0_36], %47 {strides = array<i32>} : memref<1x128xf32, #tpu.memory_space<vmem>>, vector<1x128xf32>,
    } else {
    }
    %c0_15 = arith.constant 0 : index
    %c0_16 = arith.constant 0 : index
    %31 = vector.load %arg9[%c0_15, %c0_16] : memref<16x128xf32, #tpu.memory_space<vmem>>, vector<16x128xf32>
    %32 = arith.addf %31, %15 : vector<16x128xf32>
    %c0_17 = arith.constant 0 : index
    %c0_18 = arith.constant 0 : index
    %33 = vector.load %arg9[%c0_17, %c0_18] : memref<16x128xf32, #tpu.memory_space<vmem>>, vector<16x128xf32>
    tpu.vector_store %arg9[%c0_17, %c0_18], %32 {strides = array<i32>} : memref<16x128xf32, #tpu.memory_space<vmem>>, vector<16x128xf32>,
    %c0_19 = arith.constant 0 : index
    %c0_20 = arith.constant 0 : index
    %34 = vector.load %arg10[%c0_19, %c0_20] : memref<1x128xf32, #tpu.memory_space<vmem>>, vector<1x128xf32>
    %35 = arith.addf %34, %22 : vector<1x128xf32>
    %c0_21 = arith.constant 0 : index
    %c0_22 = arith.constant 0 : index
    %36 = vector.load %arg10[%c0_21, %c0_22] : memref<1x128xf32, #tpu.memory_space<vmem>>, vector<1x128xf32>
    tpu.vector_store %arg10[%c0_21, %c0_22], %35 {strides = array<i32>} : memref<1x128xf32, #tpu.memory_space<vmem>>, vector<1x128xf32>,
    %c0_23 = arith.constant 0 : index
    %c0_24 = arith.constant 0 : index
    %37 = vector.load %arg11[%c0_23, %c0_24] : memref<1x128xf32, #tpu.memory_space<vmem>>, vector<1x128xf32>
    %38 = arith.addf %37, %27 : vector<1x128xf32>
    %c0_25 = arith.constant 0 : index
    %c0_26 = arith.constant 0 : index
    %39 = vector.load %arg11[%c0_25, %c0_26] : memref<1x128xf32, #tpu.memory_space<vmem>>, vector<1x128xf32>
    tpu.vector_store %arg11[%c0_25, %c0_26], %38 {strides = array<i32>} : memref<1x128xf32, #tpu.memory_space<vmem>>, vector<1x128xf32>,
    %c1_i32 = arith.constant 1 : i32
    %40 = arith.cmpi eq, %arg1, %c1_i32 : i32
    %41 = arith.extui %40 : i1 to i32
    %c0_i32_27 = arith.constant 0 : i32
    %42 = arith.cmpi ne, %41, %c0_i32_27 : i32
    scf.if %42 {
      %c0_28 = arith.constant 0 : index
      %c0_29 = arith.constant 0 : index
      %43 = vector.load %arg5[%c0_28, %c0_29] : memref<1x128xf32, #tpu.memory_space<vmem>>, vector<1x128xf32>
      %c0_30 = arith.constant 0 : index
      %c0_31 = arith.constant 0 : index
      %44 = vector.load %arg6[%c0_30, %c0_31] : memref<1x128xf32, #tpu.memory_space<vmem>>, vector<1x128xf32>
      %c0_32 = arith.constant 0 : index
      %c0_33 = arith.constant 0 : index
      %45 = vector.load %arg8[%c0_32, %c0_33] : memref<1x128xf32, #tpu.memory_space<vmem>>, vector<1x128xf32>
      %cst_34 = arith.constant 2.000000e+01 : f32
      %46 = vector.broadcast %cst_34 : f32 to vector<1x128xf32>
      %47 = arith.cmpf ogt, %44, %46 : vector<1x128xf32>
      %cst_35 = arith.constant 2.000000e+01 : f32
      %48 = vector.broadcast %cst_35 : f32 to vector<1x128xf32>
      %49 = arith.minimumf %44, %48 : vector<1x128xf32>
      %50 = math.exp %49 : vector<1x128xf32>
      %51 = math.log1p %50 : vector<1x128xf32>
      %52 = arith.select %47, %44, %51 : vector<1x128xi1>, vector<1x128xf32>
      %cst_36 = arith.constant 9.99999997E-7 : f32
      %53 = vector.broadcast %cst_36 : f32 to vector<1x128xf32>
      %54 = arith.addf %53, %52 : vector<1x128xf32>
      %55 = arith.mulf %54, %45 : vector<1x128xf32>
      %56 = arith.addf %43, %55 : vector<1x128xf32>
      %c0_37 = arith.constant 0 : index
      %c0_38 = arith.constant 0 : index
      %57 = vector.load %arg9[%c0_37, %c0_38] : memref<16x128xf32, #tpu.memory_space<vmem>>, vector<16x128xf32>
      %58 = vector.broadcast %56 : vector<1x128xf32> to vector<16x128xf32>
      %59 = arith.addf %57, %58 : vector<16x128xf32>
      %c0_39 = arith.constant 0 : index
      %c0_40 = arith.constant 0 : index
      %60 = vector.load %arg9[%c0_39, %c0_40] : memref<16x128xf32, #tpu.memory_space<vmem>>, vector<16x128xf32>
      tpu.vector_store %arg9[%c0_39, %c0_40], %59 {strides = array<i32>} : memref<16x128xf32, #tpu.memory_space<vmem>>, vector<16x128xf32>,
      %c0_41 = arith.constant 0 : index
      %c0_42 = arith.constant 0 : index
      %61 = vector.load %arg10[%c0_41, %c0_42] : memref<1x128xf32, #tpu.memory_space<vmem>>, vector<1x128xf32>
      %62 = math.log %54 : vector<1x128xf32>
      %63 = arith.mulf %45, %45 : vector<1x128xf32>
      %cst_43 = arith.constant 5.000000e-01 : f32
      %64 = vector.broadcast %cst_43 : f32 to vector<1x128xf32>
      %65 = arith.mulf %64, %63 : vector<1x128xf32>
      %66 = arith.addf %62, %65 : vector<1x128xf32>
      %67 = arith.addf %61, %66 : vector<1x128xf32>
      %c0_44 = arith.constant 0 : index
      %c0_45 = arith.constant 0 : index
      %68 = vector.load %arg10[%c0_44, %c0_45] : memref<1x128xf32, #tpu.memory_space<vmem>>, vector<1x128xf32>
      tpu.vector_store %arg10[%c0_44, %c0_45], %67 {strides = array<i32>} : memref<1x128xf32, #tpu.memory_space<vmem>>, vector<1x128xf32>,
      %cst_46 = arith.constant 0.000000e+00 : f32
      %69 = vector.broadcast %cst_46 : f32 to vector<1x128xf32>
      %70 = arith.subf %56, %69 : vector<1x128xf32>
      %c0_47 = arith.constant 0 : index
      %c0_48 = arith.constant 0 : index
      %71 = vector.load %arg11[%c0_47, %c0_48] : memref<1x128xf32, #tpu.memory_space<vmem>>, vector<1x128xf32>
      %72 = arith.mulf %70, %70 : vector<1x128xf32>
      %73 = arith.addf %71, %72 : vector<1x128xf32>
      %c0_49 = arith.constant 0 : index
      %c0_50 = arith.constant 0 : index
      %74 = vector.load %arg11[%c0_49, %c0_50] : memref<1x128xf32, #tpu.memory_space<vmem>>, vector<1x128xf32>
      tpu.vector_store %arg11[%c0_49, %c0_50], %73 {strides = array<i32>} : memref<1x128xf32, #tpu.memory_space<vmem>>, vector<1x128xf32>,
    } else {
    }
    return
  }
  func.func @transform_0(%arg0: i32, %arg1: i32) -> (i32, i32) {
    %c0_i32 = arith.constant 0 : i32
    %c0_i32_0 = arith.constant 0 : i32
    return %c0_i32, %arg1 : i32, i32
  }
  func.func @transform_1(%arg0: i32, %arg1: i32) -> (i32, i32) {
    %c0_i32 = arith.constant 0 : i32
    return %arg1, %arg0 : i32, i32
  }
  func.func @transform_2(%arg0: i32, %arg1: i32) -> (i32, i32) {
    %c0_i32 = arith.constant 0 : i32
    return %arg1, %arg0 : i32, i32
  }
  func.func @transform_3(%arg0: i32, %arg1: i32) -> (i32, i32) {
    %c0_i32 = arith.constant 0 : i32
    %c0_i32_0 = arith.constant 0 : i32
    return %c0_i32, %arg0 : i32, i32
  }
  func.func @transform_4(%arg0: i32, %arg1: i32) -> (i32, i32) {
    %c0_i32 = arith.constant 0 : i32
    %c0_i32_0 = arith.constant 0 : i32
    return %c0_i32, %arg0 : i32, i32
  }
  func.func @transform_5(%arg0: i32, %arg1: i32) -> (i32, i32) {
    %c0_i32 = arith.constant 0 : i32
    return %arg1, %arg0 : i32, i32
  }
  func.func @transform_6(%arg0: i32, %arg1: i32) -> (i32, i32) {
    %c0_i32 = arith.constant 0 : i32
    %c0_i32_0 = arith.constant 0 : i32
    return %c0_i32, %arg0 : i32, i32
  }
  func.func @transform_7(%arg0: i32, %arg1: i32) -> (i32, i32) {
    %c0_i32 = arith.constant 0 : i32
    %c0_i32_0 = arith.constant 0 : i32
    return %c0_i32, %arg0 : i32, i32
  }
  func.func @transform_8(%arg0: i32, %arg1: i32) -> (i32, i32) {
    %c0_i32 = arith.constant 0 : i32
    %c0_i32_0 = arith.constant 0 : i32
    return %c0_i32, %arg0 : i32, i32
  }
  func.func @transform_9(%arg0: i32, %arg1: i32) -> (i32, i32) {
    %c0_i32 = arith.constant 0 : i32
    %c0_i32_0 = arith.constant 0 : i32
    return %c0_i32, %arg0 : i32, i32
  }
}

</mosaic_0001>

<bundles_post_ra>
// kernel: tpu_custom_call.1
= control target key start
LH: loop header
LB: loop body
LE: loop exit
PB: predicated region body
PF: predicated region fallthrough
CT: control target
= control target key end

     0   :  { %s3152_s0 = inlined_call_operand.hbm [shape: f32[16,256], index: 0, kind: input, shape index: {}]   ;;  %s3153_s1 = inlined_call_operand.hbm [shape: f32[256,256], index: 1, kind: input, shape index: {}]   ;;  %s3154_s2 = inlined_call_operand.hbm [shape: f32[256,256], index: 2, kind: input, shape index: {}]   ;;  %s3155_s3 = inlined_call_operand.vmem [shape: f32[1,256], index: 3, kind: input, shape index: {}]   ;;  %s3156_s4 = inlined_call_operand.vmem [shape: f32[1,256], index: 4, kind: input, shape index: {}]   ;;  %s3157_s5 = inlined_call_operand.hbm [shape: f32[256,256], index: 5, kind: input, shape index: {}]   ;;  %s3158_s6 = inlined_call_operand.vmem [shape: f32[1,256], index: 6, kind: input, shape index: {}]   ;;  %s3159_s7 = inlined_call_operand.hbm [shape: f32[16,256], index: 7, kind: output, shape index: {0}]   ;;  %s3160_s8 = inlined_call_operand.hbm [shape: f32[1,256], index: 8, kind: output, shape index: {1}]   ;;  %s3161_s9 = inlined_call_operand.hbm [shape: f32[1,256], index: 9, kind: output, shape index: {2}]  }
   0x1   :  { %3191 = sst [smem:[#allocation33_spill]] %s3152_s0 }
   0x2   :  { %3192 = sst [smem:[#allocation34_spill]] %s3153_s1 }
   0x3   :  { %3193 = sst [smem:[#allocation35_spill]] %s3155_s3 }
   0x4   :  { %3194 = sst [smem:[#allocation36_spill]] %s3156_s4 }
   0x5   :  { %3195 = sst [smem:[#allocation37_spill]] %s3158_s6 }
   0x6   :  { %3196 = sst [smem:[#allocation38_spill]] %s3159_s7 }
   0x7   :  { %3197 = sst [smem:[#allocation39_spill]] %s3160_s8 }
   0x8   :  { %3198 = sst [smem:[#allocation40_spill]] %s3161_s9 }
   0x9   :  { %15 = vsyncpa [#allocation3], 0 }
   0xa   :  { %17 = vsyncpa [#allocation3 + $0x1], 0 }
   0xb   :  { %18 = vsyncpa [#allocation6], 0 }
   0xc   :  { %20 = vsyncpa [#allocation6 + $0x1], 0 }
   0xd   :  { %21 = vsyncpa [#allocation9], 0 }
   0xe   :  { %23 = vsyncpa [#allocation9 + $0x1], 0 }
   0xf   :  { %24 = vsyncpa [#allocation4], 0 }
  0x10   :  { %26 = vsyncpa [#allocation4 + $0x1], 0 }
  0x11   :  { %27 = vsyncpa [#allocation12], 0 }
  0x12   :  { %29 = vsyncpa [#allocation12 + $0x1], 0  ;;  %s2218_s30 = smov 0   ;;  %s2220_s10 = smov 0  }
  0x13   :  { %s2222_s11 = smov 0   ;;  %s2224_s12 = smov 0  }
  0x14   :  { %s2226_s13 = smov 0   ;;  %s2228_s14 = smov 0  }
  0x15   :  { %s2230_s15 = smov 0   ;;  %s2232_s16 = smov 0  }
  0x16   :  { %s2234_s17 = smov 0   ;;  %s2236_s18 = smov 0  }
  0x17   :  { %s2238_s19 = smov 0   ;;  %s2240_s20 = smov 0  }
  0x18   :  { %s2242_s21 = smov 0   ;;  %s2244_s22 = smov 0  }
  0x19 LB: > { %3199 = sst [smem:[#allocation19_spill]] %s2100_s30  ;;  %s44_s24 = sadd.s32 1, %s2144_s20  ;;  %s2152_s22 = sphi %s2244_s22, %s35_s22   ;;  %s2148_s21 = sphi %s2242_s21, %s3306_s21   ;;  %s2144_s20 = sphi %s2240_s20, %s3296_s20   ;;  %s2140_s19 = sphi %s2238_s19, %s3295_s19   ;;  %s2136_s18 = sphi %s2236_s18, %s3294_s18   ;;  %s2132_s17 = sphi %s2234_s17, %s3293_s17   ;;  %s2128_s16 = sphi %s2232_s16, %s3305_s16   ;;  %s2124_s15 = sphi %s2230_s15, %s3304_s15   ;;  %s2120_s14 = sphi %s2228_s14, %s3303_s14   ;;  %s2116_s13 = sphi %s2226_s13, %s3302_s13   ;;  %s2112_s12 = sphi %s2224_s12, %s3301_s12   ;;  %s2108_s11 = sphi %s2222_s11, %s3290_s11   ;;  %s2104_s10 = sphi %s2220_s10, %s3300_s10   ;;  %s2100_s30 = sphi %s2218_s30, %s3299_s30  }
  0x1a   : > { %3200 = sst [smem:[#allocation20_spill]] %s2108_s11  ;;  %p45_p0 = scmp.ge.s32.totalorder %s44_s24, 2 }
  0x1b   : > { %3201 = sst [smem:[#allocation21_spill]] %s2132_s17  ;;  %s47_s25 = sadd.s32 1, %s2148_s21 }
  0x1c   : > { %3202 = sst [smem:[#allocation22_spill]] %s2136_s18  ;;  %p3172_p1 = scmp.eq.s32.totalorder %s2152_s22, 0 }
  0x1d   : > { %3203 = sst [smem:[#allocation23_spill]] %s2144_s20  ;;  %s82_s26 = sadd.s32 1, %s2120_s14 }
  0x1e   : > { %3204 = sst [smem:[#allocation24_spill]] %s2148_s21  ;;  %s3308_s24 = smov (%p45_p0, %s44_s24), 0 }
  0x1f   : > { %3205 = sst [smem:[#allocation25_spill]] %s2152_s22  ;;  %s3310_s25 = smov (!%p45_p0, %s47_s25), %s2148_s21 }
  0x20   : > { %3206 = sst [smem:[#allocation26_spill]] %s3308_s24  ;;  %s2298_s27 = ssub.s32 %s2144_s20, %s3308_s24 }
  0x21   : > { %p89_p2 = scmp.ne.s32.totalorder %s2120_s14, %s2116_s13  ;;  %p49_p3 = scmp.ge.s32.totalorder %s3310_s25, 2 }
  0x22   : > { %s242_s29 = sadd.s32 1, %s2108_s11  ;;  %p258_p8 = scmp.ne.s32.totalorder %s2104_s10, %s2100_s30 }
  0x23   : > { %p2305_p5 = por %p89_p2, %p3172_p1  ;;  %s3312_s25 = smov (%p49_p3, %s3310_s25), 0 }
  0x24   : > { %3208 = sst [smem:[#allocation27_spill]] %s3312_s25  ;;  %s78_s23 = ssub.s32 %s2148_s21, %s3312_s25 }
  0x25   : > { %s79_s24 = sor.u32 %s78_s23, %s2298_s27  ;;  %p240_p9 = scmp.eq.s32.totalorder %s78_s23, 0 }
  0x26   : > { %p80_p10 = scmp.eq.s32.totalorder %s79_s24, 0  ;;  %s3209_s9 = sadd.s32 4294967294, %s2152_s22  }
  0x27   : > { %p259_p11 = scmp.eq.s32.totalorder %s3209_s9, 3  ;;  %p3171_p13 = scmp.lt.s32.totalorder %s2152_s22, 4 }
  0x28   : > { %s2324_s7 = scalar_select %p240_p9, %s2108_s11, %s242_s29  }
  0x29   : > { %s2327_s8 = scalar_select %p80_p10, %s2120_s14, %s82_s26  }
  0x2a   : > { %3210 = sst [smem:[#allocation28_spill]] %s2324_s7  ;;  %p2329_p12 = por %p259_p11, %p258_p8 }
  0x2b   : > { %3211 = sst [smem:[#allocation29_spill]] %s2327_s8  ;;  %s351_s25 = sand.u32 1, %s2152_s22  }
  0x2c   : > { %s3212_s18 = scalar_select %p2329_p12, 1, 0 }
  0x2d   : > { %s3168_s30 = sand.u32 1, %s2120_s14   ;;  %s1470_s24 = sshll.u32 %s2144_s20, 5 }
  0x2e   : > { %3213 = sst [smem:[#allocation30_spill]] %s3212_s18  ;;  %s2338_s23 = sshll.u32 %s3168_s30, 7 }
  0x2f   : > { %s361_s6 = sadd.s32 %s2148_s21, %s1470_s24  ;;  %s355_s9 = scalar_lea.vmem [#allocation5], %s2338_s23 }
  0x30   : > { %s364_s4 = sshll.u32 %s355_s9, 4  ;;  %s2343_s29 = sshll.u32 %s361_s6, 7  ;;  %s2345_s4 = int_to_ptr.vmem [resolvable:$true] %s364_s4 }
  0x31   : > { %s3214_s1 = sld [smem:[#allocation34_spill]]  ;;  %p2357_p0 = pnand %p3171_p13, %p2305_p5 }
  0x32   : > { %s2363_s6 = scalar_lea.sflag [#allocation6], %s351_s25 }
  0x33   : > { %s3215_s24 = scalar_select %p2357_p0, 1, 0 }
  0x34   : > { %p2369_p9 = pneg %p2357_p0 }
  0x37   : > { %s2351_s7 = scalar_lea.hbm %s3214_s1, %s2343_s29  ;;  %s1823_s30 = scalar_lea.hbm %s3214_s1, 8192 }
  0x38   : > { %s1818_s9 = scalar_lea.hbm %s2351_s7, 2048  ;;  %p1824_p5 = scmp.lt.u32.totalorder %s2351_s7, %s3214_s1 }
  0x39   : > { %p1819_p8 = scmp.ne.s32.totalorder %s2351_s7, %s1818_s9  ;;  %p1825_p13 = scmp.lt.u32.totalorder %s1823_s30, %s1818_s9 }
  0x3a   : > { %p1827_p6 = scmp.lt.u32.totalorder %s1818_s9, %s2351_s7 }
  0x3b   : > { %p1821_p10 = pnand %p2369_p9, %p1819_p8  ;;  %p1826_p7 = por %p1825_p13, %p1824_p5 }
  0x3d   : > { %p1822_p11 = pneg %p1821_p10  ;;  %p1828_p1 = por %p1827_p6, %p1826_p7 }
  0x3f   : > { %p1829_p4 = pnand %p1828_p1, %p1822_p11 }
  0x41   : > { %1832 = shalt.err (!%p1829_p4)
}
  0x42   : > { %s1833_s25 = scalar_lea.vmem %s2345_s4, 2048  ;;  %s2154_s28 = smov [#allocation5]  }
  0x43   : > { %p1834_p8 = scmp.ne.s32.totalorder %s2345_s4, %s1833_s25  ;;  %s1838_s26 = sshll.u32 %s2154_s28, 4  ;;  %s1839_s26 = int_to_ptr.vmem [resolvable:$false] %s1838_s26 }
  0x44   : > { %s1840_s18 = scalar_lea.vmem %s1839_s26, 4096  ;;  %p1841_p3 = scmp.lt.s32.totalorder %s2345_s4, %s1839_s26 }
  0x45   : > { %p1836_p10 = pnand %p1834_p8, %p2369_p9  ;;  %p1842_p12 = scmp.lt.s32.totalorder %s1840_s18, %s1833_s25 }
  0x47   : > { %p1837_p2 = pneg %p1836_p10  ;;  %p1843_p13 = por %p1842_p12, %p1841_p3 }
  0x49   : > { %p1844_p5 = pnand %p1843_p13, %p1837_p2 }
  0x4b   : > { %1847 = shalt.err (!%p1844_p5)
}
  0x4c   : > { %s3173_s30 = smov 256   ;;  %s3175_s21 = smov 128  }
  0x4d   : > { %s3177_s9 = smov 8   ;;  %p3217_p1 = scmp.lt.s32.totalorder %s2152_s22, 5 }
  0x4e   : > { %1578 = dma.hbm_to_vmem [thread:$0]  (!%p2357_p0), %s2351_s7, 2048, %s2345_s4, %s2363_s6, %s3173_s30, %s3175_s21, %s3177_s9  }
  0x4f   : > { %p3218_p4 = scmp.ge.s32.totalorder %s2152_s22, 1  ;;  %s2405_s28 = sadd.s32 4294967295, %s2152_s22  }
  0x50   : > { %s54_s26 = sadd.s32 1, %s2132_s17  ;;  %p3220_p7 = scmp.eq.s32.totalorder %s2298_s27, 0 }
  0x51   : > { %p2400_p6 = pnand %p3218_p4, %p3217_p1  ;;  %p61_p12 = scmp.ne.s32.totalorder %s2132_s17, %s2128_s16 }
  0x52   : > { %s2411_s18 = scalar_select %p3220_p7, %s2132_s17, %s54_s26  }
  0x53   : > { %s3219_s25 = scalar_select %p2400_p6, 1, 0 }
  0x54   : > { %3221 = sst [smem:[#allocation31_spill]] %s2411_s18  ;;  %p67_p2 = scmp.ne.s32.totalorder %s2128_s16, %s2124_s15 }
  0x55   : > { %p68_p3 = scmp.eq.s32.totalorder %s2405_s28, 0  ;;  %p253_p11 = scmp.eq.s32.totalorder %s2405_s28, 3 }
  0x56   : > { %p3222_p8 = scmp.eq.s32.totalorder %s2152_s22, 0  ;;  %s331_s4 = sand.u32 1, %s2132_s17  }
  0x57   : > { %p2422_p13 = por %p68_p3, %p67_p2  ;;  %p3224_p5 = scmp.ne.s32.totalorder %s2116_s13, %s2112_s12 }
  0x58   : > { %p63_p10 = por %p3222_p8, %p61_p12  ;;  %p3226_p4 = scmp.ne.s32.totalorder %s2108_s11, %s2104_s10 }
  0x59   : > { %s3223_s7 = scalar_select %p2422_p13, 1, 0 }
  0x5a   : > { %p2429_p1 = por %p3224_p5, %p68_p3  ;;  %p2436_p7 = por %p253_p11, %p3226_p4 }
  0x5b   : > { %s1442_s15 = sshll.u32 %s331_s4, 4  ;;  %s1443_s26 = sshll.u32 %s2144_s20, 7 }
  0x5c   : > { %s3225_s30 = scalar_select %p2429_p1, 1, 0 }
  0x5d   : > { %s3227_s27 = scalar_select %p2436_p7, 1, 0 }
  0x5e   : > { %s3229_s0 = sld [smem:[#allocation33_spill]]  ;;  %s335_s12 = scalar_lea.vmem [#allocation2], %s1442_s15 }
  0x5f   : > { %3228 = sst [smem:[#allocation32_spill]] %s3227_s27  ;;  %s341_s18 = sshll.u32 %s335_s12, 4  ;;  %s2452_s18 = int_to_ptr.vmem [resolvable:$true] %s341_s18 }
  0x60   : > { %p3230_p12 = scmp.lt.s32.totalorder %s2152_s22, 4  ;;  %s2458_s21 = scalar_lea.hbm %s3154_s2, %s2343_s29 }
  0x61   : > { %s2460_s9 = scalar_lea.sflag [#allocation3], %s331_s4 }
  0x62   : > { %p2448_p2 = pnand %p3230_p12, %p63_p10 }
  0x64   : > { %s2444_s1 = scalar_lea.hbm %s3229_s0, %s1443_s26  ;;  %p1850_p11 = pneg %p2448_p2 }
  0x65   : > { %s1848_s26 = scalar_lea.hbm %s2444_s1, 256  ;;  %s1853_s22 = scalar_lea.hbm %s3229_s0, 512 }
  0x66   : > { %p1849_p3 = scmp.ne.s32.totalorder %s2444_s1, %s1848_s26  ;;  %p1854_p5 = scmp.lt.u32.totalorder %s2444_s1, %s3229_s0 }
  0x67   : > { %p1855_p4 = scmp.lt.u32.totalorder %s1853_s22, %s1848_s26  ;;  %p1857_p7 = scmp.lt.u32.totalorder %s1848_s26, %s2444_s1 }
  0x68   : > { %p1851_p8 = pnand %p1850_p11, %p1849_p3 }
  0x69   : > { %p1856_p12 = por %p1855_p4, %p1854_p5 }
  0x6a   : > { %p1852_p10 = pneg %p1851_p8 }
  0x6b   : > { %p1858_p1 = por %p1857_p7, %p1856_p12 }
  0x6d   : > { %p1859_p13 = pnand %p1858_p1, %p1852_p10 }
  0x6f   : > { %1862 = shalt.err (!%p1859_p13)
}
  0x70   : > { %s1863_s11 = scalar_lea.vmem %s2452_s18, 256  ;;  %s2158_s20 = smov [#allocation2]  }
  0x71   : > { %p1864_p3 = scmp.ne.s32.totalorder %s2452_s18, %s1863_s11  ;;  %s1868_s4 = sshll.u32 %s2158_s20, 4  ;;  %s1869_s4 = int_to_ptr.vmem [resolvable:$false] %s1868_s4 }
  0x72   : > { %s1870_s3 = scalar_lea.vmem %s1869_s4, 512  ;;  %p1871_p0 = scmp.lt.s32.totalorder %s2452_s18, %s1869_s4 }
  0x73   : > { %p1866_p8 = pnand %p1864_p3, %p1850_p11  ;;  %p1872_p5 = scmp.lt.s32.totalorder %s1870_s3, %s1863_s11 }
  0x75   : > { %p1867_p6 = pneg %p1866_p8  ;;  %p1873_p4 = por %p1872_p5, %p1871_p0 }
  0x77   : > { %p1874_p7 = pnand %p1873_p4, %p1867_p6 }
  0x79   : > { %1877 = shalt.err (!%p1874_p7)
}
  0x7a   : > { %s3232_s22 = smov 8   ;;  %s3233_s27 = smov 128  }
  0x7b   : > { %s3234_s26 = smov 256   ;;  %s378_s15 = scalar_lea.vmem [#allocation7], %s2338_s23 }
  0x7c   : > { %1575 = dma.hbm_to_vmem [thread:$0]  (!%p2448_p2), %s2444_s1, 256, %s2452_s18, %s2460_s9, %s3234_s26, %s3233_s27, %s3232_s22  }
  0x7d   : > { %s387_s12 = sshll.u32 %s378_s15, 4  ;;  %s1878_s11 = scalar_lea.hbm %s2458_s21, 2048  ;;  %s2492_s12 = int_to_ptr.vmem [resolvable:$true] %s387_s12 }
  0x7e   : > { %p1879_p0 = scmp.ne.s32.totalorder %s2458_s21, %s1878_s11  ;;  %s1883_s4 = scalar_lea.hbm %s3154_s2, 8192 }
  0x7f   : > { %p1884_p1 = scmp.lt.u32.totalorder %s2458_s21, %s3154_s2  ;;  %p1885_p11 = scmp.lt.u32.totalorder %s1883_s4, %s1878_s11 }
  0x80   : > { %p1881_p6 = pnand %p1879_p0, %p2369_p9  ;;  %p1887_p2 = scmp.lt.u32.totalorder %s1878_s11, %s2458_s21 }
  0x81   : > { %p1886_p10 = por %p1885_p11, %p1884_p1 }
  0x82   : > { %p1882_p13 = pneg %p1881_p6 }
  0x83   : > { %p1888_p12 = por %p1887_p2, %p1886_p10 }
  0x85   : > { %p1889_p3 = pnand %p1888_p12, %p1882_p13 }
  0x87   : > { %1892 = shalt.err (!%p1889_p3)
}
  0x88   : > { %s1893_s1 = scalar_lea.vmem %s2492_s12, 2048  ;;  %s2159_s18 = smov [#allocation7]  }
  0x89   : > { %p1894_p8 = scmp.ne.s32.totalorder %s2492_s12, %s1893_s1  ;;  %s1898_s9 = sshll.u32 %s2159_s18, 4  ;;  %s1899_s9 = int_to_ptr.vmem [resolvable:$false] %s1898_s9 }
  0x8a   : > { %s1900_s0 = scalar_lea.vmem %s1899_s9, 4096  ;;  %p1901_p7 = scmp.lt.s32.totalorder %s2492_s12, %s1899_s9 }
  0x8b   : > { %p1896_p5 = pnand %p1894_p8, %p2369_p9  ;;  %p1902_p0 = scmp.lt.s32.totalorder %s1900_s0, %s1893_s1 }
  0x8d   : > { %p1897_p4 = pneg %p1896_p5  ;;  %p1903_p6 = por %p1902_p0, %p1901_p7 }
  0x8f   : > { %p1904_p1 = pnand %p1903_p6, %p1897_p4 }
  0x91   : > { %1907 = shalt.err (!%p1904_p1)
}
  0x92   : > { %p3235_p13 = scmp.ne.s32.totalorder %s3215_s24, 0  ;;  %s2523_s17 = scalar_lea.hbm %s3157_s5, %s2343_s29 }
  0x93   : > { %s413_s20 = scalar_lea.vmem [#allocation8], %s2338_s23  ;;  %s3236_s3 = sand.u32 1, %s2120_s14  }
  0x94   : > { %1581 = dma.hbm_to_vmem [thread:$0]  (!%p3235_p13), %s2458_s21, 2048, %s2492_s12, %s2363_s6, %s3234_s26, %s3233_s27, %s3232_s22  }
  0x95   : > { %s422_s4 = sshll.u32 %s413_s20, 4  ;;  %s2530_s1 = scalar_lea.sflag [#allocation9], %s3236_s3  ;;  %s2526_s4 = int_to_ptr.vmem [resolvable:$true] %s422_s4 }
  0x96   : > { %s1908_s18 = scalar_lea.hbm %s2523_s17, 2048  ;;  %s1913_s29 = scalar_lea.hbm %s3157_s5, 8192 }
  0x97   : > { %p1909_p11 = scmp.ne.s32.totalorder %s2523_s17, %s1908_s18  ;;  %p1914_p12 = scmp.lt.u32.totalorder %s2523_s17, %s3157_s5 }
  0x98   : > { %p1915_p3 = scmp.lt.u32.totalorder %s1913_s29, %s1908_s18  ;;  %p1917_p5 = scmp.lt.u32.totalorder %s1908_s18, %s2523_s17 }
  0x99   : > { %p1911_p10 = pnand %p1909_p11, %p2369_p9 }
  0x9a   : > { %p1916_p8 = por %p1915_p3, %p1914_p12 }
  0x9b   : > { %p1912_p2 = pneg %p1911_p10 }
  0x9c   : > { %p1918_p4 = por %p1917_p5, %p1916_p8 }
  0x9e   : > { %p1919_p7 = pnand %p1918_p4, %p1912_p2 }
  0xa0   : > { %1922 = shalt.err (!%p1919_p7)
}
  0xa1   : > { %s1923_s23 = scalar_lea.vmem %s2526_s4, 2048  ;;  %s2160_s0 = smov [#allocation8]  }
  0xa2   : > { %p1924_p0 = scmp.ne.s32.totalorder %s2526_s4, %s1923_s23  ;;  %s1928_s15 = sshll.u32 %s2160_s0, 4  ;;  %s1929_s15 = int_to_ptr.vmem [resolvable:$false] %s1928_s15 }
  0xa3   : > { %s1930_s11 = scalar_lea.vmem %s1929_s15, 4096  ;;  %p1931_p11 = scmp.lt.s32.totalorder %s2526_s4, %s1929_s15 }
  0xa4   : > { %p1926_p6 = pnand %p1924_p0, %p2369_p9  ;;  %p1932_p10 = scmp.lt.s32.totalorder %s1930_s11, %s1923_s23 }
  0xa6   : > { %p1927_p1 = pneg %p1926_p6  ;;  %p1933_p12 = por %p1932_p10, %p1931_p11 }
  0xa8   : > { %p1934_p3 = pnand %p1933_p12, %p1927_p1 }
  0xaa   : > { %1937 = shalt.err (!%p1934_p3)
}
  0xab   : > { %1584 = dma.hbm_to_vmem [thread:$0]  (!%p3235_p13), %s2523_s17, 2048, %s2526_s4, %s2530_s1, %s3234_s26, %s3233_s27, %s3232_s22  }
  0xac   : > { %p3237_p9 = scmp.ne.s32.totalorder %s3219_s25, 0 }
  0xad   : > { %s442_s8 = sand.u32 (!%p3237_p9), 1, %s2128_s16   ;;  %p3238_p2 = scmp.ne.s32.totalorder (!%p3237_p9), %s3223_s7, 0 }
  0xae   : > { %440 = sbr.rel (%p3237_p9) target bundleno = 659 (0x293), region = 48  ;;  %s2560_s20 = sshll.u32 (!%p3237_p9), %s442_s8, 4 }
  0xaf   : > { %s443_s3 = scalar_lea.sflag (!%p3237_p9), [#allocation3], %s442_s8  ;;  %s446_s18 = scalar_lea.vmem (!%p3237_p9), [#allocation2], %s2560_s20 }
  0xb5   : > { %2079 = dma.done.wait (%p3238_p2), %s443_s3, 256  }
  0xb6   : > { %2081 = vsyncadd (%p3238_p2), %s443_s3, 4294967040  ;;  %s451_s24 = sand.u32 1, %s2405_s28   ;;  %s453_s25 = sand.u32 1, %s2116_s13  }
  0xb7   : > { %s1458_s22 = sshll.u32 %s453_s25, 7  ;;  %s452_s27 = scalar_lea.sflag [#allocation6], %s451_s24 }
  0xb8   : > { %s2571_s26 = scalar_lea.vmem [#allocation5], %s1458_s22  ;;  %p3239_p13 = scmp.ne.s32.totalorder %s3225_s30, 0 }
  0xba   : > { %2083 = dma.done.wait (%p3239_p13), %s452_s27, 4096  }
  0xbb   : > { %2085 = vsyncadd (%p3239_p13), %s452_s27, 4294963200  ;;  %s2577_s17 = scalar_lea.vmem [#allocation7], %s1458_s22  ;;  %s470_s7 = scalar_lea.sflag [#allocation9], %s453_s25 }
  0xbc   : > { %s2579_s4 = scalar_lea.vmem [#allocation8], %s1458_s22 }
  0xbd   : > { %2087 = dma.done.wait (%p3239_p13), %s470_s7, 2048  }
  0xbe   : > { %2089 = vsyncadd (%p3239_p13), %s470_s7, 4294965248  ;;  %s2586_s1 = sand.u32 1, %s2104_s10   ;;  %p542_p8 = scmp.lt.s32.totalorder %s2140_s19, 1  ;;  %v2606_v0 = vld [vmem:[%s2577_s17] sm:$0xff]  ;;  %v2609_v1 = vld [vmem:[%s2577_s17 + $0x8] sm:$0xff] }
  0xbf   : > { %s1461_s6 = sshll.u32 %s2586_s1, 4  ;;  %s3240_s30 = sld [smem:[#allocation35_spill]]  ;;  %v616_v2 = vmin.f32 %v2606_v0, 20.0  ;;  %v617_v3 = vmin.f32 %v2609_v1, 20.0  ;;  %v2614_v4 = vld [vmem:[%s2577_s17 + $0x10] sm:$0xff]  ;;  %v2617_v6 = vld [vmem:[%s2577_s17 + $0x18] sm:$0xff] }
  0xc0   : > { %s2591_s21 = scalar_select %p542_p8, %s2140_s19, 1  ;;  %v618_v8 = vmin.f32 %v2614_v4, 20.0  ;;  %v619_v9 = vmin.f32 %v2617_v6, 20.0  ;;  %v2622_v10 = vld [vmem:[%s2577_s17 + $0x20] sm:$0xff]  ;;  %v2625_v11 = vld [vmem:[%s2577_s17 + $0x28] sm:$0xff]  ;;  %v2630_v16 = vld [vmem:[%s2577_s17 + $0x30] sm:$0xff] }
  0xc1   : > { %s3241_s15 = sld [smem:[#allocation36_spill]]  ;;  %s3242_s25 = sld [smem:[#allocation37_spill]]  ;;  %v632_v5 = vmul.f32 1.442695, %v616_v2  ;;  %v634_v7 = vmul.f32 1.442695, %v617_v3 }
  0xc2   : > { %v636_v12 = vmul.f32 1.442695, %v618_v8  ;;  %v638_v13 = vmul.f32 1.442695, %v619_v9  ;;  %v620_v14 = vmin.f32 %v2622_v10, 20.0  ;;  %v621_v15 = vmin.f32 %v2625_v11, 20.0 }
  0xc3   : > { %1716 = vpow2.f32 %v632_v5  ;;  %v2633_v17 = vld [vmem:[%s2577_s17 + $0x38] sm:$0xff]  ;;  %v2636_v18 = vld [vmem:[%s2579_s4] sm:$0xff]  ;;  %v2639_v19 = vld [vmem:[%s2579_s4 + $0x8] sm:$0xff]  ;;  %v622_v24 = vmin.f32 %v2630_v16, 20.0  ;;  %vm600_vm1 = vcmp.gt.f32.partialorder %v2606_v0, 20.0  ;;  %vm601_vm2 = vcmp.gt.f32.partialorder %v2609_v1, 20.0 }
  0xc4   : > { %1718 = vpow2.f32 %v634_v7  ;;  %v640_v20 = vmul.f32 1.442695, %v620_v14  ;;  %v981_v21 = vmul.f32 %v2636_v18, %v2636_v18  ;;  %v982_v22 = vmul.f32 %v2639_v19, %v2639_v19  ;;  %v2648_v26 = vld [vmem:[%s2577_s17 + $0x40] sm:$0xff]  ;;  %v2651_v27 = vld [vmem:[%s2579_s4 + $0x10] sm:$0xff]  ;;  %v2654_v28 = vld [vmem:[%s2579_s4 + $0x18] sm:$0xff]  ;;  %s2963_s20 = scalar_lea.vmem [#allocation10], %s1461_s6 }
  0xc5   : > { %s544_s9 = scalar_lea.vmem %s3240_s30, %s2591_s21  ;;  %1720 = vpow2.f32 %v636_v12  ;;  %v642_v23 = vmul.f32 1.442695, %v621_v15  ;;  %v623_v25 = vmin.f32 %v2633_v17, 20.0  ;;  %v2657_v29 = vld [vmem:[%s2577_s17 + $0x48] sm:$0xff]  ;;  %v983_v30 = vmul.f32 %v2651_v27, %v2651_v27  ;;  %v2662_v31 = vld [vmem:[%s2579_s4 + $0x20] sm:$0xff]  ;;  %v2686_v54 = vld [vmem:[%s2579_s4 + $0x30] sm:$0xff] }
  0xc6   : > { %1722 = vpow2.f32 %v638_v13  ;;  %v644_v32 = vmul.f32 1.442695, %v622_v24  ;;  %v624_v34 = vmin.f32 %v2648_v26, 20.0  ;;  %v2665_v35 = vmul.f32 0.5, %v981_v21  ;;  %v2672_v38 = vld [vmem:[%s2579_s4 + $0x28] sm:$0xff]  ;;  %v872_v15 = vld [vmem:[%s446_s18] sm:$0xff] }
  0xc7   : > { %s547_s11 = scalar_lea.vmem %s3241_s15, %s2591_s21  ;;  %s551_s22 = scalar_lea.vmem %s3242_s25, %s2591_s21  ;;  %1724 = vpow2.f32 %v640_v20  ;;  %v646_v33 = vmul.f32 1.442695, %v623_v25  ;;  %v2667_v36 = vmul.f32 0.5, %v982_v22  ;;  %v984_v37 = vmul.f32 %v2654_v28, %v2654_v28  ;;  %1523 = vmatprep.mubr.f32.mxu0 %v872_v15 }
  0xc8   : > { %1726 = vpow2.f32 %v642_v23  ;;  %v985_v39 = vmul.f32 %v2662_v31, %v2662_v31  ;;  %v986_v41 = vmul.f32 %v2672_v38, %v2672_v38  ;;  %v625_v42 = vmin.f32 %v2657_v29, 20.0  ;;  %s2969_s27 = scalar_lea.vmem [#allocation13], %s2586_s1 }
  0xc9   : > { %1728 = vpow2.f32 %v644_v32  ;;  %v648_v43 = vmul.f32 1.442695, %v624_v34  ;;  %v2679_v50 = vmul.f32 0.5, %v983_v30  ;;  %v2681_v52 = vmul.f32 0.5, %v984_v37 }
  0xca   : > { %1730 = vpow2.f32 %v646_v33  ;;  %v2683_v53 = vmul.f32 0.5, %v985_v39  ;;  %v2688_v57 = vmul.f32 0.5, %v986_v41  ;;  %v2692_v58 = vmul.f32 %v2686_v54, %v2686_v54 }
  0xcb   : > { %1732 = vpow2.f32 %v648_v43  ;;  %v2698_v63 = vmul.f32 1.442695, %v625_v42  ;;  %vm602_vm4 = vcmp.gt.f32.partialorder %v2614_v4, 20.0  ;;  %vm603_vm6 = vcmp.gt.f32.partialorder %v2617_v6, 20.0 }
  0xcc   : > { %vm604_vm8 = vcmp.gt.f32.partialorder %v2622_v10, 20.0  ;;  %vm605_vm11 = vcmp.gt.f32.partialorder %v2625_v11, 20.0  ;;  %vm606_vm13 = vcmp.gt.f32.partialorder %v2630_v16, 20.0  ;;  %vm607_vm15 = vcmp.gt.f32.partialorder %v2633_v17, 20.0 }
  0xcd   : > { %v1717_v40 = vpop.eup %1716 }
  0xce   : > { %v1719_v44 = vpop.eup %1718  ;;  %v664_v45 = vadd.f32 1.0, %v1717_v40  ;;  %v667_v46 = vmul.f32 -0.5, %v1717_v40  ;;  %v670_v47 = vand.u32 2147483647, %v1717_v40 }
  0xcf   : > { %v673_v48 = vadd.f32 1.0, %v1719_v44  ;;  %v676_v49 = vmul.f32 -0.5, %v1719_v44  ;;  %v679_v51 = vand.u32 2147483647, %v1719_v44  ;;  %v1721_v55 = vpop.eup %1720 }
  0xd0   : > { %1734 = vlog2.f32 %v664_v45  ;;  %v668_v56 = vadd.f32 1.0, %v667_v46  ;;  %v1723_v59 = vpop.eup %1722  ;;  %vm2694_vm0 = vcmp.lt.f32.partialorder %v670_v47, 0.0004427343  ;;  %v682_v61 = vadd.f32 1.0, %v1721_v55 }
  0xd1   : > { %1736 = vlog2.f32 %v673_v48  ;;  %v685_v62 = vmul.f32 -0.5, %v1721_v55  ;;  %v1725_v2 = vpop.eup %1724  ;;  %v677_v3 = vadd.f32 1.0, %v676_v49  ;;  %v688_v5 = vand.u32 2147483647, %v1721_v55 }
  0xd2   : > { %v691_v7 = vadd.f32 1.0, %v1723_v59  ;;  %v694_v8 = vmul.f32 -0.5, %v1723_v59  ;;  %v1727_v9 = vpop.eup %1726  ;;  %vm2702_vm3 = vcmp.lt.f32.partialorder %v679_v51, 0.0004427343  ;;  %1738 = vlog2.f32 %v682_v61 }
  0xd3   : > { %v697_v13 = vand.u32 2147483647, %v1723_v59  ;;  %v700_v14 = vadd.f32 1.0, %v1725_v2  ;;  %v686_v20 = vadd.f32 1.0, %v685_v62  ;;  %v703_v22 = vmul.f32 -0.5, %v1725_v2  ;;  %v1729_v30 = vpop.eup %1728 }
  0xd4   : > { %1740 = vlog2.f32 %v691_v7  ;;  %v695_v21 = vadd.f32 1.0, %v694_v8  ;;  %v669_v23 = vmul.f32 %v1717_v40, %v668_v56  ;;  %v706_v24 = vand.u32 2147483647, %v1725_v2  ;;  %v1731_v39 = vpop.eup %1730 }
  0xd5   : > { %1742 = vlog2.f32 %v700_v14  ;;  %v709_v25 = vadd.f32 1.0, %v1727_v9  ;;  %v678_v32 = vmul.f32 %v1719_v44, %v677_v3  ;;  %vm2709_vm5 = vcmp.lt.f32.partialorder %v688_v5, 0.0004427343  ;;  %v2714_v43 = vpop.eup %1732 }
  0xd6   : > { %v704_v34 = vadd.f32 1.0, %v703_v22  ;;  %v712_v37 = vmul.f32 -0.5, %v1727_v9  ;;  %v715_v41 = vand.u32 2147483647, %v1727_v9  ;;  %v718_v42 = vadd.f32 1.0, %v1729_v30 }
  0xd7   : > { %1744 = vlog2.f32 %v709_v25  ;;  %v721_v40 = vmul.f32 -0.5, %v1729_v30  ;;  %v687_v45 = vmul.f32 %v1721_v55, %v686_v20  ;;  %v696_v46 = vmul.f32 %v1723_v59, %v695_v21 }
  0xd8   : > { %vm2716_vm7 = vcmp.lt.f32.partialorder %v697_v13, 0.0004427343  ;;  %v713_v47 = vadd.f32 1.0, %v712_v37  ;;  %vm2721_vm9 = vcmp.lt.f32.partialorder %v706_v24, 0.0004427343  ;;  %v727_v56 = vadd.f32 1.0, %v1731_v39 }
  0xd9   : > { %v722_v51 = vadd.f32 1.0, %v721_v40  ;;  %v730_v61 = vmul.f32 -0.5, %v1731_v39  ;;  %v705_v5 = vmul.f32 %v1725_v2, %v704_v34  ;;  %1746 = vlog2.f32 %v718_v42  ;;  %v553_v42 = vld [vmem:[%s2571_s26 + $0x8] sm:$0xff] }
  0xda   : > { %v1735_v48 = vpop.eup %1734  ;;  %v724_v55 = vand.u32 2147483647, %v1729_v30  ;;  %v2725_v7 = vmul.f32 %v1727_v9, %v713_v47  ;;  %vm2727_vm10 = vcmp.lt.f32.partialorder %v715_v41, 0.0004427343  ;;  %1748 = vlog2.f32 %v727_v56 }
  0xdb   : > { %v1737_v62 = vpop.eup %1736  ;;  %v666_v3 = vmul.f32 0.6931472, %v1735_v48  ;;  %v731_v13 = vadd.f32 1.0, %v730_v61  ;;  %v2734_v15 = vmul.f32 %v1729_v30, %v722_v51  ;;  %v733_v2 = vand.u32 2147483647, %v1731_v39 }
  0xdc   : > { %v675_v59 = vmul.f32 0.6931472, %v1737_v62  ;;  %v736_v20 = vadd.f32 1.0, %v2714_v43  ;;  %v1739_v21 = vpop.eup %1738  ;;  %1750 = vpow2.f32 %v2698_v63  ;;  %v739_v60 = vmul.f32 -0.5, %v2714_v43 }
  0xdd   : > { %v672_v14 = vsel %vm2694_vm0, %v669_v23, %v666_v3  ;;  %v684_v30 = vmul.f32 0.6931472, %v1739_v21  ;;  %vm2747_vm12 = vcmp.lt.f32.partialorder %v724_v55, 0.0004427343  ;;  %v2752_v41 = vmul.f32 %v1731_v39, %v731_v13  ;;  %v554_v3 = vld [vmem:[%s2571_s26 + $0x10] sm:$0xff]  ;;  %v555_v13 = vld [vmem:[%s2571_s26 + $0x18] sm:$0xff] }
  0xde   : > { %v681_v9 = vsel %vm2702_vm3, %v678_v32, %v675_v59  ;;  %v808_v22 = vsel %vm600_vm1, %v2606_v0, %v672_v14  ;;  %v1741_v23 = vpop.eup %1740  ;;  %1752 = vlog2.f32 %v736_v20  ;;  %v552_v32 = vld [vmem:[%s2571_s26] sm:$0xff]  ;;  %v2754_v63 = vadd.f32 1.0, %v739_v60 }
  0xdf   : > { %v809_v24 = vsel %vm601_vm2, %v2609_v1, %v681_v9  ;;  %v824_v25 = vadd.f32 1e-06, %v808_v22  ;;  %v1743_v12 = vpop.eup %1742  ;;  %v693_v0 = vmul.f32 0.6931472, %v1741_v23  ;;  %v690_v1 = vsel %vm2709_vm5, %v687_v45, %v684_v30  ;;  %v556_v21 = vld [vmem:[%s2571_s26 + $0x20] sm:$0xff] }
  0xe0   : > { %v825_v37 = vadd.f32 1e-06, %v809_v24  ;;  %v702_v47 = vmul.f32 0.6931472, %v1743_v12  ;;  %vm2761_vm14 = vcmp.lt.f32.partialorder %v733_v2, 0.0004427343  ;;  %v810_v33 = vsel %vm602_vm4, %v2614_v4, %v690_v1 }
  0xe1   : > { %v840_v40 = vmul.f32 %v824_v25, %v2636_v18  ;;  %1754 = vlog2.f32 %v824_v25  ;;  %v1745_v51 = vpop.eup %1744  ;;  %v699_v18 = vsel %vm2716_vm7, %v696_v46, %v693_v0  ;;  %v826_v61 = vadd.f32 1e-06, %v810_v33 }
  0xe2   : > { %v841_v39 = vmul.f32 %v825_v37, %v2639_v19  ;;  %1756 = vlog2.f32 %v825_v37  ;;  %v811_v56 = vsel %vm603_vm6, %v2617_v6, %v699_v18  ;;  %v708_v19 = vsel %vm2721_vm9, %v705_v5, %v702_v47  ;;  %v557_v37 = vld [vmem:[%s2571_s26 + $0x28] sm:$0xff] }
  0xe3   : > { %v856_v45 = vadd.f32 %v840_v40, %v552_v32  ;;  %v827_v44 = vadd.f32 1e-06, %v811_v56  ;;  %v711_v46 = vmul.f32 0.6931472, %v1745_v51  ;;  %v812_v4 = vsel %vm604_vm8, %v2622_v10, %v708_v19  ;;  %v1747_v55 = vpop.eup %1746  ;;  %v591_v56 = vld [vmem:[%s2579_s4 + $0x38] sm:$0xff] }
  0xe4   : > { %v857_v62 = vadd.f32 %v841_v39, %v553_v42  ;;  %v842_v14 = vmul.f32 %v826_v61, %v2651_v27  ;;  %1758 = vlog2.f32 %v826_v61  ;;  %v828_v6 = vadd.f32 1e-06, %v812_v4  ;;  %v1749_v2 = vpop.eup %1748  ;;  %v558_v4 = vld [vmem:[%s2571_s26 + $0x30] sm:$0xff] }
  0xe5   : > { %v1050_v59 = vmul.f32 %v856_v45, %v856_v45  ;;  %v843_v5 = vmul.f32 %v827_v44, %v2654_v28  ;;  %1760 = vlog2.f32 %v827_v44  ;;  %v717_v22 = vsel %vm2727_vm10, %v2725_v7, %v711_v46 }
  0xe6   : > { %v1526_v20 = vpack.c.bf16 %v857_v62, %v856_v45  ;;  %v1051_v49 = vmul.f32 %v857_v62, %v857_v62  ;;  %v858_v9 = vadd.f32 %v842_v14, %v554_v3  ;;  %v844_v10 = vmul.f32 %v828_v6, %v2662_v31  ;;  %v2789_v60 = vpop.eup %1750 }
  0xe7   : > { %1762 = vlog2.f32 %v828_v6  ;;  %v859_v23 = vadd.f32 %v843_v5, %v555_v13  ;;  %v813_v28 = vsel %vm605_vm11, %v2625_v11, %v717_v22  ;;  %v720_v24 = vmul.f32 0.6931472, %v1747_v55  ;;  %v559_v55 = vld [vmem:[%s2571_s26 + $0x38] sm:$0xff] }
  0xe8   : > { %1527 = vmatprep.subr.bf16.mxu0 %v1526_v20  ;;  %v1066_v27 = vadd.f32 %v1051_v49, %v1050_v59  ;;  %v1753_v25 = vpop.eup %1752  ;;  %v1052_v30 = vmul.f32 %v858_v9, %v858_v9  ;;  %v829_v12 = vadd.f32 1e-06, %v813_v28  ;;  %v860_v8 = vadd.f32 %v844_v10, %v556_v21  ;;  %v2832_v28 = vld [vmem:[%s2577_s17 + $0x58] sm:$0xff] }
  0xe9   : > { %1529 = vmatpush3.bf16.msra.mxu0 %v1526_v20  ;;  %v729_v7 = vmul.f32 0.6931472, %v1749_v2  ;;  %v1530_v32 = vpack.c.bf16 %v859_v23, %v858_v9  ;;  %v1053_v31 = vmul.f32 %v859_v23, %v859_v23  ;;  %v726_v0 = vsel %vm2747_vm12, %v2734_v15, %v720_v24 }
  0xea   : > { %v2798_v42 = vmul.f32 0.6931472, %v1753_v25  ;;  %v1067_v1 = vadd.f32 %v1066_v27, %v1052_v30  ;;  %v845_v11 = vmul.f32 %v829_v12, %v2672_v38  ;;  %1764 = vlog2.f32 %v829_v12 }
  0xeb   : > { %v1755_v40 = vpop.eup %1754  ;;  %v1054_v47 = vmul.f32 %v860_v8, %v860_v8  ;;  %1531 = vmatprep.subr.bf16.mxu0 %v1530_v32  ;;  %v735_v18 = vsel %vm2761_vm14, %v2752_v41, %v729_v7  ;;  %v814_v15 = vsel %vm606_vm13, %v2630_v16, %v726_v0  ;;  %v741_v34 = vmul.f32 %v2714_v43, %v2754_v63 }
  0xec   : > { %v1757_v51 = vpop.eup %1756  ;;  %v950_v39 = vmul.f32 0.6931472, %v1755_v40  ;;  %v1068_v38 = vadd.f32 %v1067_v1, %v1053_v31  ;;  %v861_v45 = vadd.f32 %v845_v11, %v557_v37  ;;  %v815_v61 = vsel %vm607_vm15, %v2633_v17, %v735_v18  ;;  %v592_v11 = vld [vmem:[%s2579_s4 + $0x40] sm:$0xff] }
  0xed   : > { %v952_v33 = vmul.f32 0.6931472, %v1757_v51  ;;  %1533 = vmatpush3.bf16.msra.mxu0 %v1530_v32  ;;  %v830_v48 = vadd.f32 1e-06, %v814_v15  ;;  %v831_v19 = vadd.f32 1e-06, %v815_v61  ;;  %v988_v25 = vmul.f32 %v591_v56, %v591_v56 }
  0xee   : > { %v1013_v41 = vadd.f32 %v2665_v35, %v950_v39  ;;  %v742_v16 = vand.u32 2147483647, %v2714_v43  ;;  %v1759_v62 = vpop.eup %1758  ;;  %v1534_v3 = vpack.c.bf16 %v861_v45, %v860_v8  ;;  %v1055_v44 = vmul.f32 %v861_v45, %v861_v45  ;;  %v2851_v45 = vld [vmem:[%s2577_s17 + $0x68] sm:$0xff] }
  0xef   : > { %v1014_v63 = vadd.f32 %v2667_v36, %v952_v33  ;;  %v1069_v46 = vadd.f32 %v1068_v38, %v1054_v47  ;;  %v1761_v59 = vpop.eup %1760  ;;  %v954_v13 = vmul.f32 0.6931472, %v1759_v62  ;;  %v846_v14 = vmul.f32 %v830_v48, %v2686_v54  ;;  %v2847_v47 = vld [vmem:[%s2577_s17 + $0x60] sm:$0xff] }
  0xf0   : > { %v847_v6 = vmul.f32 %v831_v19, %v591_v56  ;;  %1766 = vlog2.f32 %v830_v48  ;;  %v956_v2 = vmul.f32 0.6931472, %v1761_v59  ;;  %1535 = vmatprep.subr.bf16.mxu0 %v1534_v3  ;;  %vm608_vm0 = vcmp.gt.f32.partialorder %v2648_v26, 20.0  ;;  %v560_v33 = vld [vmem:[%s2571_s26 + $0x40] sm:$0xff] }
  0xf1   : > { %v1763_v17 = vpop.eup %1762  ;;  %v1029_v35 = vadd.f32 %v1014_v63, %v1013_v41  ;;  %v1070_v43 = vadd.f32 %v1069_v46, %v1055_v44  ;;  %1768 = vlog2.f32 %v831_v19  ;;  %v1015_v36 = vadd.f32 %v2679_v50, %v954_v13  ;;  %1537 = vmatpush3.bf16.msra.mxu0 %v1534_v3  ;;  %v2829_v50 = vld [vmem:[%s2577_s17 + $0x50] sm:$0xff] }
  0xf2   : > { %v958_v20 = vmul.f32 0.6931472, %v1763_v17  ;;  %v862_v49 = vadd.f32 %v846_v14, %v558_v4  ;;  %v863_v5 = vadd.f32 %v847_v6, %v559_v55  ;;  %v1016_v21 = vadd.f32 %v2681_v52, %v956_v2  ;;  %v2858_v13 = vld [vmem:[%s2577_s17 + $0x70] sm:$0xff] }
  0xf3   : > { %vm2822_vm1 = vcmp.lt.f32.partialorder %v742_v16, 0.0004427343  ;;  %v745_v9 = vadd.f32 1.0, %v2789_v60  ;;  %v1030_v22 = vadd.f32 %v1029_v35, %v1015_v36  ;;  %v748_v7 = vmul.f32 -0.5, %v2789_v60 }
  0xf4   : > { %v1017_v10 = vadd.f32 %v2683_v53, %v958_v20  ;;  %v1538_v27 = vpack.c.bf16 %v863_v5, %v862_v49  ;;  %v1056_v23 = vmul.f32 %v862_v49, %v862_v49  ;;  %v1765_v24 = vpop.eup %1764  ;;  %v1057_v52 = vmul.f32 %v863_v5, %v863_v5  ;;  %v2865_v5 = vld [vmem:[%s2577_s17 + $0x78] sm:$0xff] }
  0xf5   : > { %v744_v30 = vsel %vm2822_vm1, %v741_v34, %v2798_v42  ;;  %1770 = vlog2.f32 %v745_v9  ;;  %v1031_v12 = vadd.f32 %v1030_v22, %v1016_v21  ;;  %v960_v8 = vmul.f32 0.6931472, %v1765_v24  ;;  %v561_v9 = vld [vmem:[%s2571_s26 + $0x48] sm:$0xff] }
  0xf6   : > { %1539 = vmatprep.subr.bf16.mxu0 %v1538_v27  ;;  %v1071_v53 = vadd.f32 %v1070_v43, %v1056_v23  ;;  %v816_v32 = vsel %vm608_vm0, %v2648_v26, %v744_v30  ;;  %v626_v31 = vmin.f32 %v2829_v50, 20.0  ;;  %v627_v37 = vmin.f32 %v2832_v28, 20.0  ;;  %v593_v43 = vld [vmem:[%s2579_s4 + $0x48] sm:$0xff] }
  0xf7   : > { %1541 = vmatpush3.bf16.msra.mxu0 %v1538_v27  ;;  %v1018_v0 = vadd.f32 %v2688_v57, %v960_v8  ;;  %v1032_v42 = vadd.f32 %v1031_v12, %v1017_v10  ;;  %v1003_v40 = vmul.f32 0.5, %v2692_v58  ;;  %v832_v51 = vadd.f32 1e-06, %v816_v32 }
  0xf8   : > { %v1072_v1 = vadd.f32 %v1071_v53, %v1057_v52  ;;  %v652_v39 = vmul.f32 1.442695, %v626_v31  ;;  %v654_v18 = vmul.f32 1.442695, %v627_v37  ;;  %v1004_v26 = vmul.f32 0.5, %v988_v25 }
  0xf9   : > { %v1033_v34 = vadd.f32 %v1032_v42, %v1018_v0  ;;  %v749_v38 = vadd.f32 1.0, %v748_v7  ;;  %v751_v57 = vand.u32 2147483647, %v2789_v60  ;;  %v848_v41 = vmul.f32 %v832_v51, %v592_v11 }
  0xfa   : > { %v1767_v15 = vpop.eup %1766  ;;  %1772 = vlog2.f32 %v832_v51  ;;  %v628_v48 = vmin.f32 %v2847_v47, 20.0  ;;  %v629_v62 = vmin.f32 %v2851_v45, 20.0  ;;  %vm609_vm3 = vcmp.gt.f32.partialorder %v2657_v29, 20.0 }
  0xfb   : > { %v1769_v56 = vpop.eup %1768  ;;  %v962_v61 = vmul.f32 0.6931472, %v1767_v15  ;;  %1774 = vpow2.f32 %v652_v39  ;;  %v864_v16 = vadd.f32 %v848_v41, %v560_v33  ;;  %v750_v3 = vmul.f32 %v2789_v60, %v749_v38 }
  0xfc   : > { %v964_v58 = vmul.f32 0.6931472, %v1769_v56  ;;  %1776 = vpow2.f32 %v654_v18  ;;  %v656_v44 = vmul.f32 1.442695, %v628_v48  ;;  %vm752_vm2 = vcmp.lt.f32.partialorder %v751_v57, 0.0004427343 }
  0xfd   : > { %v1019_v19 = vadd.f32 %v1003_v40, %v962_v61  ;;  %v1058_v55 = vmul.f32 %v864_v16, %v864_v16  ;;  %v658_v59 = vmul.f32 1.442695, %v629_v62  ;;  %v989_v6 = vmul.f32 %v592_v11, %v592_v11 }
  0xfe   : > { %v1020_v63 = vadd.f32 %v1004_v26, %v964_v58  ;;  %1778 = vpow2.f32 %v656_v44  ;;  %v630_v2 = vmin.f32 %v2858_v13, 20.0  ;;  %v631_v25 = vmin.f32 %v2865_v5, 20.0 }
  0xff   : > { %v1771_v46 = vpop.eup %1770  ;;  %v1034_v4 = vadd.f32 %v1033_v34, %v1019_v19  ;;  %v1073_v35 = vadd.f32 %v1072_v1, %v1058_v55  ;;  %1780 = vpow2.f32 %v658_v59  ;;  %v1005_v49 = vmul.f32 0.5, %v989_v6  ;;  %v595_v55 = vld [vmem:[%s2579_s4 + $0x58] sm:$0xff] }
 0x100   : > { %v747_v14 = vmul.f32 0.6931472, %v1771_v46  ;;  %v660_v21 = vmul.f32 1.442695, %v630_v2  ;;  %v990_v37 = vmul.f32 %v593_v43, %v593_v43  ;;  %v662_v40 = vmul.f32 1.442695, %v631_v25 }
 0x101   : > { %v1035_v17 = vadd.f32 %v1034_v4, %v1020_v63  ;;  %vm610_vm4 = vcmp.gt.f32.partialorder %v2829_v50, 20.0  ;;  %vm611_vm5 = vcmp.gt.f32.partialorder %v2832_v28, 20.0  ;;  %v594_v63 = vld [vmem:[%s2579_s4 + $0x50] sm:$0xff]  ;;  %vm612_vm8 = vcmp.gt.f32.partialorder %v2847_v47, 20.0 }
 0x102   : > { %v753_v60 = vsel %vm752_vm2, %v750_v3, %v747_v14  ;;  %v1006_v15 = vmul.f32 0.5, %v990_v37  ;;  %v2886_v6 = vmul.f32 %v594_v63, %v594_v63  ;;  %vm613_vm11 = vcmp.gt.f32.partialorder %v2851_v45, 20.0  ;;  %v598_v14 = vld [vmem:[%s2579_s4 + $0x70] sm:$0xff] }
 0x103   : > { %v817_v36 = vsel %vm609_vm3, %v2657_v29, %v753_v60  ;;  %v2890_v60 = vmul.f32 %v595_v55, %v595_v55  ;;  %vm614_vm13 = vcmp.gt.f32.partialorder %v2858_v13, 20.0  ;;  %vm615_vm15 = vcmp.gt.f32.partialorder %v2865_v5, 20.0 }
 0x104   : > { %v833_v20 = vadd.f32 1e-06, %v817_v36  ;;  %v1773_v54 = vpop.eup %1772 }
 0x105   : > { %v1775_v22 = vpop.eup %1774  ;;  %v966_v27 = vmul.f32 0.6931472, %v1773_v54 }
 0x106   : > { %v849_v10 = vmul.f32 %v833_v20, %v593_v43  ;;  %1782 = vlog2.f32 %v833_v20  ;;  %v1777_v23 = vpop.eup %1776  ;;  %v754_v24 = vadd.f32 1.0, %v1775_v22  ;;  %v757_v29 = vmul.f32 -0.5, %v1775_v22 }
 0x107   : > { %1784 = vpow2.f32 %v660_v21  ;;  %v1021_v30 = vadd.f32 %v1005_v49, %v966_v27  ;;  %v763_v12 = vadd.f32 1.0, %v1777_v23  ;;  %v766_v0 = vmul.f32 -0.5, %v1777_v23  ;;  %v562_v21 = vld [vmem:[%s2571_s26 + $0x50] sm:$0xff] }
 0x108   : > { %v865_v52 = vadd.f32 %v849_v10, %v561_v9  ;;  %1786 = vlog2.f32 %v754_v24  ;;  %v1779_v8 = vpop.eup %1778  ;;  %v760_v51 = vand.u32 2147483647, %v1775_v22  ;;  %v758_v39 = vadd.f32 1.0, %v757_v29 }
 0x109   : > { %v1036_v7 = vadd.f32 %v1035_v17, %v1021_v30  ;;  %1788 = vlog2.f32 %v763_v12  ;;  %v1781_v31 = vpop.eup %1780  ;;  %v772_v42 = vadd.f32 1.0, %v1779_v8  ;;  %v775_v18 = vmul.f32 -0.5, %v1779_v8 }
 0x10a   : > { %v1542_v53 = vpack.c.bf16 %v865_v52, %v864_v16  ;;  %v1059_v32 = vmul.f32 %v865_v52, %v865_v52  ;;  %v781_v11 = vadd.f32 1.0, %v1781_v31  ;;  %v767_v34 = vadd.f32 1.0, %v766_v0 }
 0x10b   : > { %1790 = vlog2.f32 %v772_v42  ;;  %v784_v26 = vmul.f32 -0.5, %v1781_v31  ;;  %v769_v38 = vand.u32 2147483647, %v1777_v23  ;;  %vm2875_vm6 = vcmp.lt.f32.partialorder %v760_v51, 0.0004427343 }
 0x10c   : > { %1543 = vmatprep.subr.bf16.mxu0 %v1542_v53  ;;  %v2869_v1 = vadd.f32 %v1073_v35, %v1059_v32  ;;  %1792 = vlog2.f32 %v781_v11  ;;  %v759_v41 = vmul.f32 %v1775_v22, %v758_v39  ;;  %v776_v58 = vadd.f32 1.0, %v775_v18  ;;  %v564_v18 = vld [vmem:[%s2571_s26 + $0x60] sm:$0xff] }
 0x10d   : > { %1545 = vmatpush3.bf16.msra.mxu0 %v1542_v53  ;;  %1794 = vpow2.f32 %v662_v40  ;;  %v778_v48 = vand.u32 2147483647, %v1779_v8  ;;  %v768_v3 = vmul.f32 %v1777_v23, %v767_v34  ;;  %v785_v44 = vadd.f32 1.0, %v784_v26  ;;  %v597_v40 = vld [vmem:[%s2579_s4 + $0x68] sm:$0xff] }
 0x10e   : > { %v787_v46 = vand.u32 2147483647, %v1781_v31  ;;  %vm2882_vm7 = vcmp.lt.f32.partialorder %v769_v38, 0.0004427343  ;;  %v777_v36 = vmul.f32 %v1779_v8, %v776_v58  ;;  %v563_v8 = vld [vmem:[%s2571_s26 + $0x58] sm:$0xff] }
 0x10f   : > { %vm2896_vm9 = vcmp.lt.f32.partialorder %v778_v48, 0.0004427343  ;;  %v786_v22 = vmul.f32 %v1781_v31, %v785_v44  ;;  %v596_v31 = vld [vmem:[%s2579_s4 + $0x60] sm:$0xff]  ;;  %v1007_v44 = vmul.f32 0.5, %v2886_v6 }
 0x110   : > { %v1783_v33 = vpop.eup %1782  ;;  %vm2906_vm10 = vcmp.lt.f32.partialorder %v787_v46, 0.0004427343 }
 0x111   : > { %v2871_v56 = vpop.eup %1784  ;;  %v968_v61 = vmul.f32 0.6931472, %v1783_v33 }
 0x112   : > { %v790_v19 = vadd.f32 1.0, %v2871_v56  ;;  %v1787_v16 = vpop.eup %1786  ;;  %v793_v2 = vmul.f32 -0.5, %v2871_v56  ;;  %v796_v52 = vand.u32 2147483647, %v2871_v56 }
 0x113   : > { %v1022_v62 = vadd.f32 %v1006_v15, %v968_v61  ;;  %v1789_v4 = vpop.eup %1788  ;;  %v756_v59 = vmul.f32 0.6931472, %v1787_v16  ;;  %v565_v61 = vld [vmem:[%s2571_s26 + $0x68] sm:$0xff] }
 0x114   : > { %1796 = vlog2.f32 %v790_v19  ;;  %v765_v35 = vmul.f32 0.6931472, %v1789_v4  ;;  %v794_v29 = vadd.f32 1.0, %v793_v2  ;;  %vm2930_vm12 = vcmp.lt.f32.partialorder %v796_v52, 0.0004427343 }
 0x115   : > { %v2888_v17 = vadd.f32 %v1036_v7, %v1022_v62  ;;  %v762_v43 = vsel %vm2875_vm6, %v759_v41, %v756_v59  ;;  %v1791_v49 = vpop.eup %1790 }
 0x116   : > { %v771_v54 = vsel %vm2882_vm7, %v768_v3, %v765_v35  ;;  %v818_v9 = vsel %vm610_vm4, %v2829_v50, %v762_v43  ;;  %v1793_v27 = vpop.eup %1792  ;;  %v774_v25 = vmul.f32 0.6931472, %v1791_v49  ;;  %v1008_v43 = vmul.f32 0.5, %v2890_v60 }
 0x117   : > { %v819_v23 = vsel %vm611_vm5, %v2832_v28, %v771_v54  ;;  %v834_v24 = vadd.f32 1e-06, %v818_v9  ;;  %v2914_v30 = vpop.eup %1794  ;;  %v783_v50 = vmul.f32 0.6931472, %v1793_v27  ;;  %v566_v54 = vld [vmem:[%s2571_s26 + $0x70] sm:$0xff] }
 0x118   : > { %v835_v12 = vadd.f32 1e-06, %v819_v23  ;;  %v780_v28 = vsel %vm2896_vm9, %v777_v36, %v774_v25  ;;  %v799_v7 = vadd.f32 1.0, %v2914_v30  ;;  %v802_v26 = vmul.f32 -0.5, %v2914_v30 }
 0x119   : > { %v850_v53 = vmul.f32 %v834_v24, %v594_v63  ;;  %1798 = vlog2.f32 %v834_v24  ;;  %v789_v37 = vsel %vm2906_vm10, %v786_v22, %v783_v50  ;;  %v820_v0 = vsel %vm612_vm8, %v2847_v47, %v780_v28 }
 0x11a   : > { %v851_v32 = vmul.f32 %v835_v12, %v595_v55  ;;  %1800 = vlog2.f32 %v835_v12  ;;  %v821_v11 = vsel %vm613_vm11, %v2851_v45, %v789_v37  ;;  %v836_v51 = vadd.f32 1e-06, %v820_v0 }
 0x11b   : > { %v866_v42 = vadd.f32 %v850_v53, %v562_v21  ;;  %1802 = vlog2.f32 %v799_v7  ;;  %v837_v15 = vadd.f32 1e-06, %v821_v11  ;;  %v795_v47 = vmul.f32 %v2871_v56, %v794_v29 }
 0x11c   : > { %v867_v39 = vadd.f32 %v851_v32, %v563_v8  ;;  %v852_v57 = vmul.f32 %v836_v51, %v596_v31  ;;  %1804 = vlog2.f32 %v836_v51  ;;  %v803_v63 = vadd.f32 1.0, %v802_v26  ;;  %v599_v32 = vld [vmem:[%s2579_s4 + $0x78] sm:$0xff] }
 0x11d   : > { %v1060_v38 = vmul.f32 %v866_v42, %v866_v42  ;;  %v853_v58 = vmul.f32 %v837_v15, %v597_v40  ;;  %1806 = vlog2.f32 %v837_v15  ;;  %v805_v3 = vand.u32 2147483647, %v2914_v30 }
 0x11e   : > { %v1797_v33 = vpop.eup %1796  ;;  %v1546_v41 = vpack.c.bf16 %v867_v39, %v866_v42  ;;  %v1061_v45 = vmul.f32 %v867_v39, %v867_v39  ;;  %v868_v19 = vadd.f32 %v852_v57, %v564_v18  ;;  %v993_v55 = vmul.f32 %v596_v31, %v596_v31  ;;  %v567_v39 = vld [vmem:[%s2571_s26 + $0x78] sm:$0xff]  ;;  %s3273_s26 = sld [smem:[#allocation22_spill]] }
 0x11f   : > { %v1075_v48 = vadd.f32 %v2869_v1, %v1060_v38  ;;  %v792_v16 = vmul.f32 0.6931472, %v1797_v33  ;;  %v869_v62 = vadd.f32 %v853_v58, %v565_v61  ;;  %v994_v36 = vmul.f32 %v597_v40, %v597_v40  ;;  %v873_v58 = vld [vmem:[%s446_s18 + $0x8] sm:$0xff]  ;;  %s2966_s18 = scalar_lea.vmem [#allocation11], %s2586_s1 }
 0x120   : > { %1547 = vmatprep.subr.bf16.mxu0 %v1546_v41  ;;  %v1062_v56 = vmul.f32 %v868_v19, %v868_v19  ;;  %v804_v9 = vmul.f32 %v2914_v30, %v803_v63  ;;  %vm2948_vm14 = vcmp.lt.f32.partialorder %v805_v3, 0.0004427343  ;;  %v1009_v24 = vmul.f32 0.5, %v993_v55 }
 0x121   : > { %v1076_v46 = vadd.f32 %v1075_v48, %v1061_v45  ;;  %1549 = vmatpush3.bf16.msra.mxu0 %v1546_v41  ;;  %v798_v4 = vsel %vm2930_vm12, %v795_v47, %v792_v16  ;;  %v1550_v1 = vpack.c.bf16 %v869_v62, %v868_v19  ;;  %v1063_v59 = vmul.f32 %v869_v62, %v869_v62 }
 0x122   : > { %v822_v35 = vsel %vm614_vm13, %v2858_v13, %v798_v4  ;;  %v1010_v30 = vmul.f32 0.5, %v994_v36  ;;  %v995_v11 = vmul.f32 %v598_v14, %v598_v14 }
 0x123   : > { %v1799_v2 = vpop.eup %1798  ;;  %v1077_v20 = vadd.f32 %v1076_v46, %v1062_v56  ;;  %v838_v49 = vadd.f32 1e-06, %v822_v35  ;;  %1551 = vmatprep.subr.bf16.mxu0 %v1550_v1 }
 0x124   : > { %v1801_v6 = vpop.eup %1800  ;;  %v970_v21 = vmul.f32 0.6931472, %v1799_v2  ;;  %v1011_v33 = vmul.f32 0.5, %v995_v11  ;;  %p1462_p5 = scmp.ne.s32.totalorder %s3273_s26, 0 }
 0x125   : > { %v1803_v10 = vpop.eup %1802  ;;  %v972_v27 = vmul.f32 0.6931472, %v1801_v6  ;;  %v1078_v23 = vadd.f32 %v1077_v20, %v1063_v59  ;;  %1553 = vmatpush3.bf16.msra.mxu0 %v1550_v1  ;;  %v854_v13 = vmul.f32 %v838_v49, %v598_v14  ;;  %1808 = vlog2.f32 %v838_v49 }
 0x126   : > { %v1023_v60 = vadd.f32 %v1007_v44, %v970_v21  ;;  %v801_v25 = vmul.f32 0.6931472, %v1803_v10  ;;  %v1805_v52 = vpop.eup %1804  ;;  %v2161_v6 = vmov (!%p1462_p5), 0.0  }
 0x127   : > { %v1024_v12 = vadd.f32 %v1008_v43, %v972_v27  ;;  %v870_v50 = vadd.f32 %v854_v13, %v566_v54  ;;  %v1807_v29 = vpop.eup %1806  ;;  %v974_v53 = vmul.f32 0.6931472, %v1805_v52  ;;  %1091 = vst [vmem:[%s2963_s20] sm:$0xff] (!%p1462_p5), %v2161_v6  ;;  %1092 = vst [vmem:[%s2963_s20 + $0x8] sm:$0xff] (!%p1462_p5), %v2161_v6 }
 0x128   : > { %v1038_v8 = vadd.f32 %v2888_v17, %v1023_v60  ;;  %v807_v28 = vsel %vm2948_vm14, %v804_v9, %v801_v25  ;;  %v976_v7 = vmul.f32 0.6931472, %v1807_v29  ;;  %1093 = vst [vmem:[%s2966_s18] sm:$0x1] (!%p1462_p5), %v2161_v6  ;;  %1094 = vst [vmem:[%s2969_s27] sm:$0x1] (!%p1462_p5), %v2161_v6 }
 0x129   : > { %v823_v31 = vsel %vm615_vm15, %v2865_v5, %v807_v28  ;;  %v1064_v37 = vmul.f32 %v870_v50, %v870_v50  ;;  %v1025_v42 = vadd.f32 %v1009_v24, %v974_v53  ;;  %v996_v5 = vmul.f32 %v599_v32, %v599_v32 }
 0x12a   : > { %v1039_v0 = vadd.f32 %v1038_v8, %v1024_v12  ;;  %v839_v40 = vadd.f32 1e-06, %v823_v31  ;;  %v1026_v51 = vadd.f32 %v1010_v30, %v976_v7 }
 0x12b   : > { %v1079_v18 = vadd.f32 %v1078_v23, %v1064_v37  ;;  %v1012_v16 = vmul.f32 0.5, %v996_v5 }
 0x12c   : > { %v1040_v15 = vadd.f32 %v1039_v0, %v1025_v42  ;;  %v855_v34 = vmul.f32 %v839_v40, %v599_v32  ;;  %1810 = vlog2.f32 %v839_v40 }
 0x12e   : > { %v1041_v17 = vadd.f32 %v1040_v15, %v1026_v51  ;;  %v871_v26 = vadd.f32 %v855_v34, %v567_v39 }
 0x12f   : > { %v1809_v38 = vpop.eup %1808 }
 0x130   : > { %v1554_v61 = vpack.c.bf16 %v871_v26, %v870_v50  ;;  %v978_v57 = vmul.f32 0.6931472, %v1809_v38  ;;  %v1065_v47 = vmul.f32 %v871_v26, %v871_v26 }
 0x132   : > { %1555 = vmatprep.subr.bf16.mxu0 %v1554_v61  ;;  %v1027_v41 = vadd.f32 %v1011_v33, %v978_v57  ;;  %v1080_v45 = vadd.f32 %v1079_v18, %v1065_v47 }
 0x133   : > { %1557 = vmatpush3.bf16.msra.mxu0 %v1554_v61 }
 0x134   : > { %v1042_v48 = vadd.f32 %v1041_v17, %v1027_v41  ;;  %v1081_v19 = vrot.slane %v1080_v45, 4 }
 0x136   : > { %v1811_v62 = vpop.eup %1810  ;;  %v1082_v63 = vadd.f32 %v1081_v19, %v1080_v45  ;;  %1524 = vmatmul.mubr.f32.vlgmr.msra.gmra.mrb[0].mxu0 %v873_v58 }
 0x137   : > { %v980_v3 = vmul.f32 0.6931472, %v1811_v62 }
 0x138   : > { %v1083_v44 = vrot.slane %v1082_v63, 2 }
 0x139   : > { %v1028_v46 = vadd.f32 %v1012_v16, %v980_v3 }
 0x13a   : > { %v1084_v56 = vadd.f32 %v1083_v44, %v1082_v63 }
 0x13b   : > { %v1043_v4 = vadd.f32 %v1042_v48, %v1028_v46 }
 0x13c   : > { %v1085_v1 = vrot.slane %v1084_v56, 1 }
 0x13d   : > { %v1044_v55 = vrot.slane %v1043_v4, 4 }
 0x13e   : > { %v1086_v59 = vadd.f32 %v1085_v1, %v1084_v56 }
 0x13f   : > { %v1045_v14 = vadd.f32 %v1044_v55, %v1043_v4 }
 0x141   : > { %v1046_v35 = vrot.slane %v1045_v14, 2 }
 0x143   : > { %v1047_v2 = vadd.f32 %v1046_v35, %v1045_v14 }
 0x145   : > { %v1048_v43 = vrot.slane %v1047_v2, 1 }
 0x147   : > { %v1049_v36 = vadd.f32 %v1048_v43, %v1047_v2 }
 0x204   : > { %1090 = sbr.rel (%p1462_p5) target bundleno = 523 (0x20b), region = 68 }
 0x209   : > { %v1525_v20 = vpop.f32.mrb[0].mxu0 }
 0x20a   : > { %v940_v49 = vpop.f32.mrb[1].mxu0 }
 0x20b PF: > { %v1095_v21 = vld [vmem:[%s2963_s20] sm:$0xff]  ;;  %v1096_v54 = vld [vmem:[%s2963_s20 + $0x8] sm:$0xff]  ;;  %s3274_s17 = sld [smem:[#allocation22_spill]] }
 0x20c   : > { %v1101_v9 = vld [vmem:[%s2966_s18] sm:$0x1]  ;;  %v1097_v22 = vadd.f32 %v1095_v21, %v940_v49  ;;  %v1098_v10 = vadd.f32 %v1525_v20, %v1096_v54 }
 0x20d   : > { %v1102_v27 = vadd.f32 %v1101_v9, %v1049_v36  ;;  %v1104_v23 = vld [vmem:[%s2969_s27] sm:$0x1] }
 0x20e   : > { %v1105_v13 = vadd.f32 %v1104_v23, %v1086_v59  ;;  %1099 = vst [vmem:[%s2963_s20] sm:$0xff] %v1097_v22  ;;  %1100 = vst [vmem:[%s2963_s20 + $0x8] sm:$0xff] %v1098_v10 }
 0x20f   : > { %1103 = vst [vmem:[%s2966_s18] sm:$0x1] %v1102_v27 }
 0x210   : > { %1106 = vst [vmem:[%s2969_s27] sm:$0x1] %v1105_v13 }
 0x211   : > { %p1463_p4 = scmp.ne.s32.totalorder %s3274_s17, 1 }
 0x212   : > { %v1112_v60 = vld [vmem:[%s547_s11] sm:$0x1] (!%p1463_p4)  ;;  %v1134_v53 = vlaneseq (!%p1463_p4) }
 0x213   : > { %1110 = sbr.rel (%p1463_p4) target bundleno = 583 (0x247), region = 72  ;;  %v1115_v24 = vmin.f32 (!%p1463_p4), %v1112_v60, 20.0  ;;  %vm1114_vm1 = vcmp.gt.f32.partialorder (!%p1463_p4), %v1112_v60, 20.0  ;;  %v1113_v37 = vld [vmem:[%s551_s22] sm:$0x1] (!%p1463_p4) }
 0x214   : > { %v1135_v31 = vshrl.u32 (!%p1463_p4), %v1134_v53, 7  ;;  %v1111_v40 = vld [vmem:[%s544_s9] sm:$0x1] (!%p1463_p4)  ;;  %v1146_v33 = vmul.f32 (!%p1463_p4), %v1113_v37, %v1113_v37 }
 0x215   : > { %v1116_v25 = vmul.f32 (!%p1463_p4), 1.442695, %v1115_v24  ;;  %v1131_v18 = vld [vmem:[%s2963_s20] sm:$0xff] (!%p1463_p4)  ;;  %v1132_v15 = vld [vmem:[%s2963_s20 + $0x8] sm:$0xff] (!%p1463_p4) }
 0x216   : > { %v1136_v51 = vsub.s32 (!%p1463_p4), 0, %v1135_v31  ;;  %v1147_v47 = vmul.f32 (!%p1463_p4), 0.5, %v1146_v33  ;;  %v1143_v45 = vld [vmem:[%s2966_s18] sm:$0x1] (!%p1463_p4) }
 0x217   : > { %1812 = vpow2.f32 (!%p1463_p4), %v1116_v25  ;;  %v1151_v34 = vld [vmem:[%s2969_s27] sm:$0x1] (!%p1463_p4) }
 0x221   : > { %v1813_v52 = vpop.eup %1812 }
 0x222   : > { %v1118_v12 = vadd.f32 1.0, %v1813_v52  ;;  %v1121_v30 = vmul.f32 -0.5, %v1813_v52  ;;  %v1124_v29 = vand.u32 2147483647, %v1813_v52 }
 0x224   : > { %1814 = vlog2.f32 %v1118_v12  ;;  %v1122_v50 = vadd.f32 1.0, %v1121_v30  ;;  %vm1125_vm0 = vcmp.lt.f32.partialorder %v1124_v29, 0.0004427343 }
 0x226   : > { %v1123_v8 = vmul.f32 %v1813_v52, %v1122_v50 }
 0x22e   : > { %v1815_v28 = vpop.eup %1814 }
 0x22f   : > { %v1120_v7 = vmul.f32 0.6931472, %v1815_v28 }
 0x231   : > { %v1126_v32 = vsel %vm1125_vm0, %v1123_v8, %v1120_v7 }
 0x232   : > { %v1127_v0 = vsel %vm1114_vm1, %v1112_v60, %v1126_v32 }
 0x233   : > { %v1128_v42 = vadd.f32 1e-06, %v1127_v0 }
 0x235   : > { %v1129_v11 = vmul.f32 %v1128_v42, %v1113_v37  ;;  %1816 = vlog2.f32 %v1128_v42 }
 0x237   : > { %v1130_v39 = vadd.f32 %v1129_v11, %v1111_v40 }
 0x239   : > { %v1137_v17 = vrot.slane %v1130_v39, %v1136_v51  ;;  %v1152_v26 = vmul.f32 %v1130_v39, %v1130_v39 }
 0x23b   : > { %v1139_v38 = vadd.f32 %v1137_v17, %v1131_v18  ;;  %v1140_v61 = vadd.f32 %v1137_v17, %v1132_v15  ;;  %v1153_v57 = vadd.f32 %v1152_v26, %v1151_v34 }
 0x23d   : > { %1141 = vst [vmem:[%s2963_s20] sm:$0xff] %v1139_v38  ;;  %1142 = vst [vmem:[%s2963_s20 + $0x8] sm:$0xff] %v1140_v61 }
 0x23e   : > { %1154 = vst [vmem:[%s2969_s27] sm:$0x1] %v1153_v57 }
 0x23f   : > { %v1817_v5 = vpop.eup %1816 }
 0x240   : > { %v1145_v41 = vmul.f32 0.6931472, %v1817_v5 }
 0x242   : > { %v1148_v58 = vadd.f32 %v1147_v47, %v1145_v41 }
 0x244   : > { %v1149_v48 = vadd.f32 %v1148_v58, %v1143_v45 }
 0x246   : > { %1150 = vst [vmem:[%s2966_s18] sm:$0x1] %v1149_v48 }
 0x247 PF: > { %s3278_s21 = sld [smem:[#allocation32_spill]]  ;;  %s1466_s9 = sshll.u32 %s2140_s19, 4 }
 0x248   : > { %s3279_s3 = sld [smem:[#allocation39_spill]]  ;;  %s1192_s22 = sshll.u32 %s2966_s18, 4  ;;  %s1193_s22 = int_to_ptr.vmem [resolvable:$true] %s1192_s22 }
 0x249   : > { %s3019_s26 = scalar_lea.sflag [#allocation12], %s451_s24  ;;  %s1938_s17 = scalar_lea.vmem %s1193_s22, 16 }
 0x24a   : > { %p1939_p7 = scmp.ne.s32.totalorder %s1193_s22, %s1938_s17  ;;  %s2162_s7 = smov [#allocation11]  }
 0x24b   : > { %s1942_s4 = sshll.u32 %s2162_s7, 4  ;;  %s1943_s4 = int_to_ptr.vmem [resolvable:$false] %s1942_s4 }
 0x24c   : > { %s1944_s6 = scalar_lea.vmem %s1943_s4, 32  ;;  %p1945_p11 = scmp.lt.s32.totalorder %s1193_s22, %s1943_s4 }
 0x24d   : > { %p3280_p0 = scmp.ne.s32.totalorder %s3278_s21, 0  ;;  %p1946_p10 = scmp.lt.s32.totalorder %s1944_s6, %s1938_s17 }
 0x24e   : > { %s3014_s25 = scalar_lea.hbm %s3279_s3, %s1466_s9 }
 0x24f   : > { %p1940_p6 = pnand %p1939_p7, %p3280_p0  ;;  %p1947_p12 = por %p1946_p10, %p1945_p11 }
 0x251   : > { %p1941_p1 = pneg %p1940_p6 }
 0x253   : > { %p1948_p3 = pnand %p1947_p12, %p1941_p1 }
 0x255   : > { %1951 = shalt.err (!%p1948_p3)
}
 0x256   : > { %s1952_s28 = scalar_lea.hbm %s3014_s25, 16  ;;  %s1956_s29 = scalar_lea.hbm %s3279_s3, 32 }
 0x257   : > { %p1953_p9 = scmp.ne.s32.totalorder %s3014_s25, %s1952_s28  ;;  %p1957_p8 = scmp.lt.u32.totalorder %s3014_s25, %s3279_s3 }
 0x258   : > { %p1958_p5 = scmp.lt.u32.totalorder %s1956_s29, %s1952_s28  ;;  %p1960_p7 = scmp.lt.u32.totalorder %s1952_s28, %s3014_s25 }
 0x259   : > { %p1954_p2 = pnand %p1953_p9, %p3280_p0 }
 0x25a   : > { %p1959_p4 = por %p1958_p5, %p1957_p8 }
 0x25b   : > { %p1955_p13 = pneg %p1954_p2 }
 0x25c   : > { %p1961_p6 = por %p1960_p7, %p1959_p4 }
 0x25e   : > { %p1962_p1 = pnand %p1961_p6, %p1955_p13 }
 0x260   : > { %1965 = shalt.err (!%p1962_p1)
}
 0x261   : > { %1567 = dma.vmem_to_hbm [thread:$0]  (%p3280_p0), %s1193_s22, 16, %s3014_s25, %s3019_s26  }
 0x262   : > { %s1465_s23 = sshll.u32 %s2140_s19, 7  ;;  %s1176_s0 = sshll.u32 %s2963_s20, 4  ;;  %s3046_s0 = int_to_ptr.vmem [resolvable:$true] %s1176_s0 }
 0x263   : > { %s3281_s8 = sld [smem:[#allocation38_spill]]  ;;  %s3282_s6 = sld [smem:[#allocation40_spill]] }
 0x264   : > { %s1156_s24 = scalar_lea.sflag [#allocation4], %s2586_s1  ;;  %s1966_s25 = scalar_lea.vmem %s3046_s0, 256 }
 0x265   : > { %p1967_p11 = scmp.ne.s32.totalorder %s3046_s0, %s1966_s25  ;;  %s2163_s20 = smov [#allocation10]  }
 0x266   : > { %s1970_s22 = sshll.u32 %s2163_s20, 4  ;;  %s1971_s22 = int_to_ptr.vmem [resolvable:$false] %s1970_s22 }
 0x267   : > { %p1968_p10 = pnand %p1967_p11, %p3280_p0  ;;  %s1972_s18 = scalar_lea.vmem %s1971_s22, 512 }
 0x268   : > { %p1973_p3 = scmp.lt.s32.totalorder %s3046_s0, %s1971_s22  ;;  %p1974_p9 = scmp.lt.s32.totalorder %s1972_s18, %s1966_s25 }
 0x269   : > { %s3044_s17 = scalar_lea.hbm %s3281_s8, %s1465_s23  ;;  %s3053_s28 = scalar_lea.hbm %s3282_s6, %s1466_s9 }
 0x26a   : > { %p1969_p12 = pneg %p1968_p10  ;;  %p1975_p2 = por %p1974_p9, %p1973_p3 }
 0x26c   : > { %p1976_p13 = pnand %p1975_p2, %p1969_p12 }
 0x26e   : > { %1979 = shalt.err (!%p1976_p13)
}
 0x26f   : > { %s1980_s19 = scalar_lea.hbm %s3044_s17, 256  ;;  %s1984_s12 = scalar_lea.hbm %s3281_s8, 512 }
 0x270   : > { %p1981_p8 = scmp.ne.s32.totalorder %s3044_s17, %s1980_s19  ;;  %p1985_p7 = scmp.lt.u32.totalorder %s3044_s17, %s3281_s8 }
 0x271   : > { %p1986_p6 = scmp.lt.u32.totalorder %s1984_s12, %s1980_s19  ;;  %p1988_p11 = scmp.lt.u32.totalorder %s1980_s19, %s3044_s17 }
 0x272   : > { %p1982_p5 = pnand %p1981_p8, %p3280_p0 }
 0x273   : > { %p1987_p1 = por %p1986_p6, %p1985_p7 }
 0x274   : > { %p1983_p4 = pneg %p1982_p5 }
 0x275   : > { %p1989_p10 = por %p1988_p11, %p1987_p1 }
 0x277   : > { %p1990_p12 = pnand %p1989_p10, %p1983_p4 }
 0x279   : > { %1993 = shalt.err (!%p1990_p12)
}
 0x27a   : > { %s2164_s15 = smov 128   ;;  %s2165_s11 = smov 256  }
 0x27b   : > { %s2166_s7 = smov 8   ;;  %s1205_s4 = sshll.u32 %s2969_s27, 4  ;;  %s1206_s4 = int_to_ptr.vmem [resolvable:$true] %s1205_s4 }
 0x27c   : > { %1566 = dma.vmem_to_hbm [thread:$0]  (%p3280_p0), %s3046_s0, 256, %s3044_s17, %s1156_s24, %s2164_s15, %s2165_s11, %s2166_s7  }
 0x27d   : > { %s1994_s25 = scalar_lea.vmem %s1206_s4, 16  ;;  %s2167_s20 = smov [#allocation13]  }
 0x27e   : > { %p1995_p3 = scmp.ne.s32.totalorder %s1206_s4, %s1994_s25  ;;  %s1998_s22 = sshll.u32 %s2167_s20, 4  ;;  %s1999_s22 = int_to_ptr.vmem [resolvable:$false] %s1998_s22 }
 0x27f   : > { %s2000_s18 = scalar_lea.vmem %s1999_s22, 32  ;;  %p2001_p13 = scmp.lt.s32.totalorder %s1206_s4, %s1999_s22 }
 0x280   : > { %p1996_p9 = pnand %p1995_p3, %p3280_p0  ;;  %p2002_p8 = scmp.lt.s32.totalorder %s2000_s18, %s1994_s25 }
 0x282   : > { %p1997_p2 = pneg %p1996_p9  ;;  %p2003_p5 = por %p2002_p8, %p2001_p13 }
 0x284   : > { %p2004_p4 = pnand %p2003_p5, %p1997_p2 }
 0x286   : > { %2007 = shalt.err (!%p2004_p4)
}
 0x287   : > { %s2008_s1 = scalar_lea.hbm %s3053_s28, 16  ;;  %s2012_s17 = scalar_lea.hbm %s3282_s6, 32 }
 0x288   : > { %p2009_p7 = scmp.ne.s32.totalorder %s3053_s28, %s2008_s1  ;;  %p2013_p11 = scmp.lt.u32.totalorder %s3053_s28, %s3282_s6 }
 0x289   : > { %p2014_p10 = scmp.lt.u32.totalorder %s2012_s17, %s2008_s1  ;;  %p2016_p3 = scmp.lt.u32.totalorder %s2008_s1, %s3053_s28 }
 0x28a   : > { %p2010_p6 = pnand %p2009_p7, %p3280_p0 }
 0x28b   : > { %p2015_p12 = por %p2014_p10, %p2013_p11 }
 0x28c   : > { %p2011_p1 = pneg %p2010_p6 }
 0x28d   : > { %p2017_p9 = por %p2016_p3, %p2015_p12 }
 0x28f   : > { %p2018_p2 = pnand %p2017_p9, %p2011_p1 }
 0x291   : > { %2021 = shalt.err (!%p2018_p2)
}
 0x292   : > { %1568 = dma.vmem_to_hbm [thread:$0]  (%p3280_p0), %s1206_s4, 16, %s3053_s28, %s3019_s26  }
 0x293 PF: > { %s3283_s9 = sld [smem:[#allocation25_spill]]  ;;  %s3284_s29 = sld [smem:[#allocation19_spill]] }
 0x294   : > { %s3285_s12 = sld [smem:[#allocation30_spill]] }
 0x299   : > { %p1596_p13 = scmp.ge.s32.totalorder %s3283_s9, 2  ;;  %s1217_s30 = sand.u32 1, %s3284_s29  }
 0x29a   : > { %p3286_p8 = scmp.ne.s32.totalorder %s3285_s12, 0  ;;  %s1218_s23 = scalar_lea.sflag [#allocation4], %s1217_s30 }
 0x29c   : > { %p1586_p5 = pnand %p1596_p13, %p3286_p8 }
 0x29e   : > { %2091 = dma.done.wait (!%p1586_p5), %s1218_s23, 256  }
 0x29f   : > { %2093 = vsyncadd (!%p1586_p5), %s1218_s23, 4294967040  ;;  %s3287_s15 = sadd.s32 4294967294, %s3283_s9  }
 0x2a0   : > { %s1226_s11 = sand.u32 1, %s3287_s15  }
 0x2a1   : > { %s1227_s7 = scalar_lea.sflag [#allocation12], %s1226_s11 }
 0x2a2   : > { %2095 = dma.done.wait (!%p1586_p5), %s1227_s7, 32  }
 0x2a3   : > { %2097 = vsyncadd (!%p1586_p5), %s1227_s7, 4294967264  ;;  %s35_s22 = sadd.s32 1, %s3283_s9   ;;  %s3289_s26 = sld [smem:[#allocation20_spill]] }
 0x2a4   : > { %p3105_p0 = scmp.ge.s32.totalorder %s35_s22, 6   ;;  %s3290_s11 = sld [smem:[#allocation28_spill]] }
 0x2a5   : > { %s3291_s28 = sld [smem:[#allocation29_spill]]  ;;  %s3292_s4 = sld [smem:[#allocation21_spill]] }
 0x2a6   : > { %s3293_s17 = sld [smem:[#allocation31_spill]]  ;;  %s3294_s18 = sld [smem:[#allocation23_spill]] }
 0x2a7   : > { %s3295_s19 = sld [smem:[#allocation24_spill]]  ;;  %s3296_s20 = sld [smem:[#allocation26_spill]] }
 0x2a8   : > { %s3297_s25 = sld [smem:[#allocation27_spill]]  ;;  %s3299_s30 = smov %s2104_s10 }
 0x2a9   : > { %s3300_s10 = smov %s3289_s26  ;;  %s3301_s12 = smov %s2116_s13 }
 0x2aa   : > { %s3302_s13 = smov %s2120_s14  ;;  %s3304_s15 = smov %s2128_s16 }
 0x2ab   : > { %s3303_s14 = smov %s3291_s28  ;;  %s3305_s16 = smov %s3292_s4 }
 0x2ac   :  { %34 = sbr.rel (!%p3105_p0) target bundleno = 25 (0x19), region = 179 }
 0x2ae   : > { %s3306_s21 = smov %s3297_s25 }
 0x2b3   :  { %1239 = vsyncpa [#allocation3], 1 }
 0x2b4   :  { %1241 = vsyncpa [#allocation3 + $0x1], 1 }
 0x2b5   :  { %1242 = vsyncpa [#allocation6], 1 }
 0x2b6   :  { %1244 = vsyncpa [#allocation6 + $0x1], 1 }
 0x2b7   :  { %1245 = vsyncpa [#allocation9], 1 }
 0x2b8   :  { %1247 = vsyncpa [#allocation9 + $0x1], 1 }
 0x2b9   :  { %1248 = vsyncpa [#allocation4], 1 }
 0x2ba   :  { %1250 = vsyncpa [#allocation4 + $0x1], 1 }
 0x2bb   :  { %1251 = vsyncpa [#allocation12], 1 }
 0x2bc   :  { %1253 = vsyncpa [#allocation12 + $0x1], 1 }

</bundles_post_ra>
